<compile_context>
chip_gen: v7x
topology: tpu7x:2x2x1
jax: 0.10.0
libtpu: 0.0.40
codegen_flags: <defaults>
</compile_context>

<pallas_src>
import functools
import math

import jax
import jax.numpy as jnp
from jax.experimental import pallas as pl
from jax.experimental.pallas import tpu as pltpu

LN_EPS = 1e-5                       # torch.nn.LayerNorm default
_SQRT1_2 = 1.0 / math.sqrt(2.0)
_DEFAULT_ROW_TILE = 512             # ~85% of HBM roofline on v6e for mem-bound kernels


# ----------------------------------------------------------------------------
# shared math (used inside kernels and by the pure-JAX reference)
# ----------------------------------------------------------------------------
def _ln(x, gamma, beta):
    mu = jnp.mean(x, axis=-1, keepdims=True)
    var = jnp.mean(jnp.square(x - mu), axis=-1, keepdims=True)
    return (x - mu) * jax.lax.rsqrt(var + LN_EPS) * gamma + beta


def _gelu(x):
    # exact erf form, matching torch.nn.GELU default
    return 0.5 * x * (1.0 + jax.lax.erf(x * _SQRT1_2))


# ----------------------------------------------------------------------------
# kernels (row-tiled over stacked before/after rows, weights resident in VMEM)
# ----------------------------------------------------------------------------
def ln_qkv_kernel(x_ref, g_ref, b_ref, w_ref, bq_ref, xn_ref, qkv_ref):
    """norm1(x) and fused Q/K/V projection of the normed activation."""
    x = x_ref[...].astype(jnp.float32)
    xn = _ln(x, g_ref[...], b_ref[...])
    xn_ref[...] = xn.astype(xn_ref.dtype)
    qkv = jnp.dot(xn.astype(jnp.bfloat16), w_ref[...],
                  preferred_element_type=jnp.float32) + bq_ref[...]
    qkv_ref[...] = qkv.astype(qkv_ref.dtype)


def out_res_ln_kernel(ctx_ref, res_ref, wo_ref, bo_ref, g_ref, b_ref, o_ref):
    """norm2(residual + out_projection(context))."""
    ctx = ctx_ref[...].astype(jnp.bfloat16)
    y = jnp.dot(ctx, wo_ref[...], preferred_element_type=jnp.float32) + bo_ref[...]
    s = res_ref[...].astype(jnp.float32) + y
    o_ref[...] = _ln(s, g_ref[...], b_ref[...]).astype(o_ref.dtype)


def mlp_res_kernel(x_ref, w1_ref, b1_ref, g1_ref, be1_ref,
                   w2_ref, b2_ref, g2_ref, be2_ref, o_ref):
    """x + Mlp(x) where Mlp = fc1 -> LayerNorm -> GELU -> fc2 -> LayerNorm (dropout p=0)."""
    x = x_ref[...].astype(jnp.float32)
    h = jnp.dot(x.astype(jnp.bfloat16), w1_ref[...],
                preferred_element_type=jnp.float32) + b1_ref[...]
    h = _gelu(_ln(h, g1_ref[...], be1_ref[...]))
    y = jnp.dot(h.astype(jnp.bfloat16), w2_ref[...],
                preferred_element_type=jnp.float32) + b2_ref[...]
    y = _ln(y, g2_ref[...], be2_ref[...])
    o_ref[...] = (x + y).astype(o_ref.dtype)
    # TODO(synk): for very large hidden (e.g. dim>=2048 on v7x, bf16 weights alone ~64 MiB),
    # tile `hidden` on a second "arbitrary" grid axis with streamed w1/w2 and a two-pass LN.


# ----------------------------------------------------------------------------
# tiling / VMEM helpers
# ----------------------------------------------------------------------------
_ROW = lambda i: (i, 0)
_SINGLE_BUFFER_OK = None


def _round_up(v, mult):
    return ((v + mult - 1) // mult) * mult


def _single_buffer_supported():
    """Probe whether pipeline_mode=pl.Buffered(1) is accepted by this install (eager call)."""
    global _SINGLE_BUFFER_OK
    if _SINGLE_BUFFER_OK is None:
        def _probe(x_ref, w_ref, o_ref):
            o_ref[...] = x_ref[...] + w_ref[...]
        try:
            pl.pallas_call(
                _probe,
                out_shape=jax.ShapeDtypeStruct((16, 128), jnp.float32),
                grid_spec=pltpu.PrefetchScalarGridSpec(
                    num_scalar_prefetch=0,
                    grid=(2,),
                    in_specs=[
                        pl.BlockSpec((8, 128), lambda i: (i, 0)),
                        pl.BlockSpec((8, 128), lambda i: (0, 0),
                                     pipeline_mode=pl.Buffered(1)),
                    ],
                    out_specs=pl.BlockSpec((8, 128), lambda i: (i, 0)),
                ),
            )(jnp.zeros((16, 128), jnp.float32), jnp.zeros((8, 128), jnp.float32))
            _SINGLE_BUFFER_OK = True
        except Exception:
            _SINGLE_BUFFER_OK = False
    return _SINGLE_BUFFER_OK


def _resident_bufs():
    return 1 if _single_buffer_supported() else 2


def _resident_spec(shape):
    """Spec for an operand that is identical at every grid step (constant index_map)."""
    const = lambda i: (0,) * len(shape)
    if _single_buffer_supported():
        return pl.BlockSpec(shape, const, pipeline_mode=pl.Buffered(1))
    return pl.BlockSpec(shape, const)


@functools.lru_cache(maxsize=None)
def _vmem_budget():
    """~75% of physical per-core VMEM; 48 MiB fallback is safe on v5e/v6e/v7x."""
    phys = 64 * 1024 * 1024
    try:
        info = pltpu.get_tpu_info()
        phys = int(getattr(info, "vmem_capacity_bytes", phys)) or phys
    except Exception:
        pass
    return int(phys * 0.75)


def _compiler_params(est_bytes):
    kwargs = dict(dimension_semantics=("parallel",))
    limit = int(est_bytes * 1.25)
    # v5e's default scoped VMEM is only 16 MiB -> raise the limit early.
    if limit > 12 * 1024 * 1024:
        kwargs["vmem_limit_bytes"] = int(min(max(limit, 16 * 1024 * 1024), _vmem_budget()))
    return pltpu.CompilerParams(**kwargs)


def _fit_tile(m, est_fn, desired=_DEFAULT_ROW_TILE):
    """Largest row tile (multiple of 8) that fits the VMEM budget; grid >= 2 when rows allow."""
    budget = _vmem_budget()
    tile = max(8, min(_round_up(desired, 8), _round_up(m, 8)))
    while tile > 8 and est_fn(tile) > budget:
        tile = max(8, _round_up(tile // 2, 8))
    n_steps = -(-m // tile)
    if n_steps == 1 and m > 8:
        n_steps = 2                       # let v7x shard the row grid across its 2 TCs
    tile = max(8, _round_up(-(-m // n_steps), 8))
    m_pad = _round_up(m, tile)
    return tile, m_pad


# rough VMEM working-set estimates (bytes) for tile selection / vmem_limit
def _est_ln_qkv(tile, d, d3, rb):
    return (tile * (2 * d + 2 * d + 2 * d3 + d3) * 4
            + d * d3 * 2 * rb + (2 * d + d3) * 4 * rb)


def _est_out_ln(tile, d, rb):
    return (tile * (2 * d + 2 * d + 2 * d + 2 * d) * 4
            + d * d * 2 * rb + 3 * d * 4 * rb)


def _est_mlp(tile, d, h, rb):
    return (tile * (2 * d + 2 * d + 2 * h) * 4
            + 2 * d * h * 2 * rb + (3 * h + 3 * d) * 4 * rb)


# ----------------------------------------------------------------------------
# pallas_call builders (cached so repeated shapes build specs once)
# ----------------------------------------------------------------------------
@functools.lru_cache(maxsize=None)
def _build_ln_qkv(m_pad, tile, d, d3):
    est = _est_ln_qkv(tile, d, d3, _resident_bufs())
    return pl.pallas_call(
        ln_qkv_kernel,
        out_shape=(jax.ShapeDtypeStruct((m_pad, d), jnp.float32),
                   jax.ShapeDtypeStruct((m_pad, d3), jnp.float32)),
        grid_spec=pltpu.PrefetchScalarGridSpec(
            num_scalar_prefetch=0,
            grid=(m_pad // tile,),
            in_specs=[pl.BlockSpec((tile, d), _ROW),
                      _resident_spec((1, d)),        # norm1 gamma
                      _resident_spec((1, d)),        # norm1 beta
                      _resident_spec((d, d3)),       # wqkv (bf16)
                      _resident_spec((1, d3))],      # bqkv
            out_specs=[pl.BlockSpec((tile, d), _ROW),
                       pl.BlockSpec((tile, d3), _ROW)],
        ),
        compiler_params=_compiler_params(est),
    )


@functools.lru_cache(maxsize=None)
def _build_out_res_ln(m_pad, tile, d):
    est = _est_out_ln(tile, d, _resident_bufs())
    return pl.pallas_call(
        out_res_ln_kernel,
        out_shape=jax.ShapeDtypeStruct((m_pad, d), jnp.float32),
        grid_spec=pltpu.PrefetchScalarGridSpec(
            num_scalar_prefetch=0,
            grid=(m_pad // tile,),
            in_specs=[pl.BlockSpec((tile, d), _ROW),   # context
                      pl.BlockSpec((tile, d), _ROW),   # residual (normed input)
                      _resident_spec((d, d)),          # wo (bf16)
                      _resident_spec((1, d)),          # bo
                      _resident_spec((1, d)),          # norm2 gamma
                      _resident_spec((1, d))],         # norm2 beta
            out_specs=pl.BlockSpec((tile, d), _ROW),
        ),
        compiler_params=_compiler_params(est),
    )


@functools.lru_cache(maxsize=None)
def _build_mlp_res(m_pad, tile, d, hidden):
    est = _est_mlp(tile, d, hidden, _resident_bufs())
    return pl.pallas_call(
        mlp_res_kernel,
        out_shape=jax.ShapeDtypeStruct((m_pad, d), jnp.float32),
        grid_spec=pltpu.PrefetchScalarGridSpec(
            num_scalar_prefetch=0,
            grid=(m_pad // tile,),
            in_specs=[pl.BlockSpec((tile, d), _ROW),
                      _resident_spec((d, hidden)),     # w1 (bf16)
                      _resident_spec((1, hidden)),     # b1
                      _resident_spec((1, hidden)),     # ln1 gamma
                      _resident_spec((1, hidden)),     # ln1 beta
                      _resident_spec((hidden, d)),     # w2 (bf16)
                      _resident_spec((1, d)),          # b2
                      _resident_spec((1, d)),          # ln2 gamma
                      _resident_spec((1, d))],         # ln2 beta
            out_specs=pl.BlockSpec((tile, d), _ROW),
        ),
        compiler_params=_compiler_params(est),
    )


# ----------------------------------------------------------------------------
# kernel wrappers (called under the outer jit; pads/slices fuse away)
# ----------------------------------------------------------------------------
def _pad_rows(x2d, m_pad):
    m = x2d.shape[0]
    return x2d if m_pad == m else jnp.pad(x2d, ((0, m_pad - m), (0, 0)))


def ln_qkv_pallas(x2d, p):
    m, d = x2d.shape
    d3 = p["wqkv"].shape[1]
    rb = _resident_bufs()
    tile, m_pad = _fit_tile(m, lambda t: _est_ln_qkv(t, d, d3, rb))
    xn, qkv = _build_ln_qkv(m_pad, tile, d, d3)(
        _pad_rows(x2d, m_pad), p["n1_g"], p["n1_b"], p["wqkv"], p["bqkv"])
    return xn[:m], qkv[:m]


def out_res_ln_pallas(ctx2d, res2d, p):
    m, d = ctx2d.shape
    rb = _resident_bufs()
    tile, m_pad = _fit_tile(m, lambda t: _est_out_ln(t, d, rb))
    out = _build_out_res_ln(m_pad, tile, d)(
        _pad_rows(ctx2d, m_pad), _pad_rows(res2d, m_pad),
        p["wo"], p["bo"], p["n2_g"], p["n2_b"])
    return out[:m]


def mlp_res_pallas(x2d, p):
    m, d = x2d.shape
    hidden = p["w1"].shape[1]
    rb = _resident_bufs()
    tile, m_pad = _fit_tile(m, lambda t: _est_mlp(t, d, hidden, rb))
    out = _build_mlp_res(m_pad, tile, d, hidden)(
        _pad_rows(x2d, m_pad),
        p["w1"], p["b1"], p["g1"], p["be1"],
        p["w2"], p["b2"], p["g2"], p["be2"])
    return out[:m]


# ----------------------------------------------------------------------------
# ProbAttention (mask_flag=False, output_attention=False) — plain JAX under jit.
# TODO(synk): the random key sampling (torch.randint), top-k query selection and the
# scatter-update of the context are data-dependent gather/scatter with no clean Pallas
# equivalent at these sizes; the projections around them are fused Pallas kernels.
# ----------------------------------------------------------------------------
def prob_attention(queries, keys, values, rng, factor=5):
    """queries/keys/values: (B, L, H, E). Returns context (B, L_Q, H, D_v)."""
    q = jnp.swapaxes(queries, 1, 2)     # (B, H, L_Q, E)
    k = jnp.swapaxes(keys, 1, 2)        # (B, H, L_K, E)
    v = jnp.swapaxes(values, 1, 2)      # (B, H, L_K, D_v)
    B, H, L_Q, E = q.shape
    L_K = k.shape[2]

    u_part = min(factor * int(math.ceil(math.log(L_K))), L_K)   # sample_k
    u = min(factor * int(math.ceil(math.log(L_Q))), L_Q)        # n_top

    # _prob_QK: sample u_part keys per query (shared over batch/heads, like torch.randint)
    index_sample = jax.random.randint(rng, (L_Q, u_part), 0, L_K)
    k_sample = k[:, :, index_sample, :]                          # (B,H,L_Q,u_part,E)
    qk_sample = jnp.einsum("bhle,bhlse->bhls", q, k_sample)
    m_meas = qk_sample.max(axis=-1) - qk_sample.sum(axis=-1) / L_K
    m_top = jax.lax.top_k(m_meas, u)[1]                          # (B,H,u)
    q_reduce = jnp.take_along_axis(q, m_top[..., None], axis=2)  # (B,H,u,E)
    scores = jnp.einsum("bhue,bhke->bhuk", q_reduce, k)          # (B,H,u,L_K)
    scores = scores * (1.0 / math.sqrt(E))                       # scale = 1/sqrt(D)

    # _get_initial_context (mask_flag=False): mean of V for every query
    context = jnp.broadcast_to(v.mean(axis=2, keepdims=True),
                               (B, H, L_Q, v.shape[-1]))
    # _update_context: softmax over keys, overwrite the selected queries
    attn = jax.nn.softmax(scores, axis=-1)
    update = jnp.einsum("bhuk,bhkd->bhud", attn, v)
    b_idx = jnp.arange(B)[:, None, None]
    h_idx = jnp.arange(H)[None, :, None]
    context = context.at[b_idx, h_idx, m_top, :].set(update)
    return jnp.swapaxes(context, 1, 2)                           # (B, L_Q, H, D_v)


# ----------------------------------------------------------------------------
# Block forward: 3 fused Pallas kernels over stacked before/after rows + ProbAttention
# ----------------------------------------------------------------------------
@functools.partial(jax.jit, static_argnames=("n_heads",))
def _block_forward_jit(p, x_before, x_after, rng, n_heads):
    B, L, dim = x_before.shape
    M = 2 * B * L

    # stack the two streams: rows [0, B*L) = before, [B*L, 2*B*L) = after
    x2d = jnp.concatenate([x_before, x_after], axis=0).reshape(M, dim).astype(jnp.float32)

    # kernel A: norm1 + fused QKV projection (shared weights, both streams at once)
    xn2d, qkv2d = ln_qkv_pallas(x2d, p)
    qkv = qkv2d.reshape(2, B, L, 3 * dim)
    q = qkv[..., :dim].reshape(2, B, L, n_heads, -1)
    k = qkv[..., dim:2 * dim].reshape(2, B, L, n_heads, -1)
    v = qkv[..., 2 * dim:].reshape(2, B, L, n_heads, -1)

    # ProbAttention core (plain JAX). NOTE: the reference module uses attn_a_b for BOTH calls.
    k1, k2 = jax.random.split(rng)
    ctx_b = prob_attention(q[1], k[0], v[0], k1)     # queries=after_norm, keys/values=before_norm
    ctx_a = prob_attention(q[0], k[1], v[1], k2)     # queries=before_norm, keys/values=after_norm
    ctx2d = jnp.concatenate([ctx_b.reshape(B * L, dim),
                             ctx_a.reshape(B * L, dim)], axis=0)

    # kernel B: out projection + residual (normed input) + norm2
    y2d = out_res_ln_pallas(ctx2d, xn2d, p)

    # kernel C: fused Mlp with the outer residual folded in  (out = y + Mlp(y))
    out2d = mlp_res_pallas(y2d, p)

    out = out2d.reshape(2, B, L, dim)
    return out[0], out[1]


def block_forward(prepared_params, x_before, x_after, rng, n_heads):
    """Block.forward([before, after]) -> [before, after, None]."""
    _single_buffer_supported()   # eager probe before tracing
    before, after = _block_forward_jit(prepared_params, x_before, x_after, rng,
                                       n_heads=n_heads)
    return [before, after, None]


# ----------------------------------------------------------------------------
# parameter prep: cast weights to bf16 and concat QKV ONCE (outside jit)
# ----------------------------------------------------------------------------
def prepare_params(params):
    a, m = params["attn"], params["mlp"]
    dim = a["wq"].shape[0]
    hidden = m["w1"].shape[1]
    f32 = jnp.float32
    return dict(
        n1_g=params["n1_g"].reshape(1, dim).astype(f32),
        n1_b=params["n1_b"].reshape(1, dim).astype(f32),
        n2_g=params["n2_g"].reshape(1, dim).astype(f32),
        n2_b=params["n2_b"].reshape(1, dim).astype(f32),
        wqkv=jnp.concatenate([a["wq"], a["wk"], a["wv"]], axis=1).astype(jnp.bfloat16),
        bqkv=jnp.concatenate([a["bq"], a["bk"], a["bv"]]).reshape(1, 3 * dim).astype(f32),
        wo=a["wo"].astype(jnp.bfloat16),
        bo=a["bo"].reshape(1, dim).astype(f32),
        w1=m["w1"].astype(jnp.bfloat16),
        b1=m["b1"].reshape(1, hidden).astype(f32),
        g1=m["g1"].reshape(1, hidden).astype(f32),
        be1=m["be1"].reshape(1, hidden).astype(f32),
        w2=m["w2"].astype(jnp.bfloat16),
        b2=m["b2"].reshape(1, dim).astype(f32),
        g2=m["g2"].reshape(1, dim).astype(f32),
        be2=m["be2"].reshape(1, dim).astype(f32),
    )


# ----------------------------------------------------------------------------
# pure-JAX reference (same bf16 matmul casts as the kernels) for validation
# ----------------------------------------------------------------------------
def _linear_ref(x, w, b):
    y = jnp.dot(x.astype(jnp.bfloat16), w.astype(jnp.bfloat16),
                preferred_element_type=jnp.float32)
    return y + b.astype(jnp.float32)


def _mlp_ref(x, p):
    h = _ln(_linear_ref(x, p["w1"], p["b1"]), p["g1"], p["be1"])
    h = _gelu(h)
    return _ln(_linear_ref(h, p["w2"], p["b2"]), p["g2"], p["be2"])


def block_ref(params, x_before, x_after, rng, n_heads):
    a = params["attn"]
    B, L, dim = x_before.shape
    k1, k2 = jax.random.split(rng)
    bn = _ln(x_before, params["n1_g"], params["n1_b"])
    an = _ln(x_after, params["n1_g"], params["n1_b"])

    def qkv(x):
        return (_linear_ref(x, a["wq"], a["bq"]).reshape(B, L, n_heads, -1),
                _linear_ref(x, a["wk"], a["bk"]).reshape(B, L, n_heads, -1),
                _linear_ref(x, a["wv"], a["bv"]).reshape(B, L, n_heads, -1))

    qb, kb_, vb = qkv(bn)
    qa, ka_, va = qkv(an)
    ctx_b = prob_attention(qa, kb_, vb, k1).reshape(B, L, dim)
    ctx_a = prob_attention(qb, ka_, va, k2).reshape(B, L, dim)
    cb = _linear_ref(ctx_b, a["wo"], a["bo"])
    ca = _linear_ref(ctx_a, a["wo"], a["bo"])
    before = _ln(bn + cb, params["n2_g"], params["n2_b"])
    after = _ln(an + ca, params["n2_g"], params["n2_b"])
    before = before + _mlp_ref(before, params["mlp"])
    after = after + _mlp_ref(after, params["mlp"])
    return before, after


# ----------------------------------------------------------------------------
# parameter init (deterministic, mimicking torch.nn.Linear / LayerNorm defaults)
# ----------------------------------------------------------------------------
def init_block_params(key, dim, n_heads, mlp_ratio=4.0):
    hidden = int(dim * mlp_ratio)
    ks = jax.random.split(key, 20)

    def linear_init(kw, kb, fan_in, fan_out):
        lim = 1.0 / math.sqrt(fan_in)
        w = jax.random.uniform(kw, (fan_in, fan_out), minval=-lim, maxval=lim,
                               dtype=jnp.float32)
        b = jax.random.uniform(kb, (fan_out,), minval=-lim, maxval=lim,
                               dtype=jnp.float32)
        return w, b

    def affine_init(kg, kb, n):
        g = 1.0 + 0.1 * jax.random.uniform(kg, (n,), minval=-1.0, maxval=1.0,
                                           dtype=jnp.float32)
        b = 0.1 * jax.random.uniform(kb, (n,), minval=-1.0, maxval=1.0,
                                     dtype=jnp.float32)
        return g, b

    wq, bq = linear_init(ks[0], ks[1], dim, dim)
    wk, bk = linear_init(ks[2], ks[3], dim, dim)
    wv, bv = linear_init(ks[4], ks[5], dim, dim)
    wo, bo = linear_init(ks[6], ks[7], dim, dim)
    w1, b1 = linear_init(ks[8], ks[9], dim, hidden)
    w2, b2 = linear_init(ks[10], ks[11], hidden, dim)
    n1_g, n1_b = affine_init(ks[12], ks[13], dim)
    n2_g, n2_b = affine_init(ks[14], ks[15], dim)
    g1, be1 = affine_init(ks[16], ks[17], hidden)
    g2, be2 = affine_init(ks[18], ks[19], dim)
    return dict(
        n1_g=n1_g, n1_b=n1_b, n2_g=n2_g, n2_b=n2_b,
        attn=dict(wq=wq, bq=bq, wk=wk, bk=bk, wv=wv, bv=bv, wo=wo, bo=bo),
        mlp=dict(w1=w1, b1=b1, g1=g1, be1=be1, w2=w2, b2=b2, g2=g2, be2=be2),
    )


if __name__ == "__main__":
    # Small but lane-dense shapes: dim, 3*dim and hidden (= 4*dim) are multiples of 128.
    B, L, dim, n_heads = 2, 8, 128, 4

    root = jax.random.PRNGKey(0)
    kp, kb, ka, ks = jax.random.split(root, 4)
    params = init_block_params(kp, dim, n_heads)
    prepared = prepare_params(params)            # bf16 weights + concatenated QKV, once
    x_before = jax.random.normal(kb, (B, L, dim), dtype=jnp.float32)
    x_after = jax.random.normal(ka, (B, L, dim), dtype=jnp.float32)

    before, after, _ = block_forward(prepared, x_before, x_after, ks, n_heads)
    before, after = jax.block_until_ready((before, after))

    ref_before, ref_after = block_ref(params, x_before, x_after, ks, n_heads)
    assert before.shape == (B, L, dim) and after.shape == (B, L, dim)
    assert jnp.allclose(before, ref_before, atol=1e-2, rtol=1e-2), "before mismatch"
    assert jnp.allclose(after, ref_after, atol=1e-2, rtol=1e-2), "after mismatch"

    print("KERNEL_OK")
</pallas_src>

<mosaic_0001>
module attributes {stable_mosaic.version = 11 : i64} {
  func.func @_probe(%arg0: i32, %arg1: memref<8x128xf32, #tpu.memory_space<vmem>>, %arg2: memref<8x128xf32, #tpu.memory_space<vmem>>, %arg3: memref<8x128xf32, #tpu.memory_space<vmem>>) attributes {dimension_semantics = [#tpu.dimension_semantics<arbitrary>], iteration_bounds = array<i64: 2>, scalar_prefetch = 0 : i64, scratch_operands = 0 : i64, tpu.core_type = #tpu.core_type<tc>, window_params = [{transform_indices = @transform_0, window_bounds = array<i64: 8, 128>}, {pipeline_mode = #tpu.pipeline_mode<synchronous>, transform_indices = @transform_1, window_bounds = array<i64: 8, 128>}, {transform_indices = @transform_2, window_bounds = array<i64: 8, 128>}]} {
    %c0 = arith.constant 0 : index
    %c0_0 = arith.constant 0 : index
    %0 = vector.load %arg1[%c0, %c0_0] : memref<8x128xf32, #tpu.memory_space<vmem>>, vector<8x128xf32>
    %c0_1 = arith.constant 0 : index
    %c0_2 = arith.constant 0 : index
    %1 = vector.load %arg2[%c0_1, %c0_2] : memref<8x128xf32, #tpu.memory_space<vmem>>, vector<8x128xf32>
    %2 = arith.addf %0, %1 : vector<8x128xf32>
    %c0_3 = arith.constant 0 : index
    %c0_4 = arith.constant 0 : index
    %3 = vector.load %arg3[%c0_3, %c0_4] : memref<8x128xf32, #tpu.memory_space<vmem>>, vector<8x128xf32>
    tpu.vector_store %arg3[%c0_3, %c0_4], %2 {strides = array<i32>} : memref<8x128xf32, #tpu.memory_space<vmem>>, vector<8x128xf32>,
    return
  }
  func.func @transform_0(%arg0: i32) -> (i32, i32) {
    %c0_i32 = arith.constant 0 : i32
    %c0_i32_0 = arith.constant 0 : i32
    return %arg0, %c0_i32 : i32, i32
  }
  func.func @transform_1(%arg0: i32) -> (i32, i32) {
    %c0_i32 = arith.constant 0 : i32
    %c0_i32_0 = arith.constant 0 : i32
    %c0_i32_1 = arith.constant 0 : i32
    return %c0_i32, %c0_i32_0 : i32, i32
  }
  func.func @transform_2(%arg0: i32) -> (i32, i32) {
    %c0_i32 = arith.constant 0 : i32
    %c0_i32_0 = arith.constant 0 : i32
    return %arg0, %c0_i32 : i32, i32
  }
}

module attributes {stable_mosaic.version = 11 : i64} {
  func.func @ln_qkv_kernel(%arg0: i32, %arg1: memref<16x128xf32, #tpu.memory_space<vmem>>, %arg2: memref<1x128xf32, #tpu.memory_space<vmem>>, %arg3: memref<1x128xf32, #tpu.memory_space<vmem>>, %arg4: memref<128x384xbf16, #tpu.memory_space<vmem>>, %arg5: memref<1x384xf32, #tpu.memory_space<vmem>>, %arg6: memref<16x128xf32, #tpu.memory_space<vmem>>, %arg7: memref<16x384xf32, #tpu.memory_space<vmem>>) attributes {dimension_semantics = [#tpu.dimension_semantics<parallel>], iteration_bounds = array<i64: 2>, scalar_prefetch = 0 : i64, scratch_operands = 0 : i64, tpu.core_type = #tpu.core_type<tc>, window_params = [{transform_indices = @transform_0, window_bounds = array<i64: 16, 128>}, {pipeline_mode = #tpu.pipeline_mode<synchronous>, transform_indices = @transform_1, window_bounds = array<i64: 1, 128>}, {pipeline_mode = #tpu.pipeline_mode<synchronous>, transform_indices = @transform_2, window_bounds = array<i64: 1, 128>}, {pipeline_mode = #tpu.pipeline_mode<synchronous>, transform_indices = @transform_3, window_bounds = array<i64: 128, 384>}, {pipeline_mode = #tpu.pipeline_mode<synchronous>, transform_indices = @transform_4, window_bounds = array<i64: 1, 384>}, {transform_indices = @transform_5, window_bounds = array<i64: 16, 128>}, {transform_indices = @transform_6, window_bounds = array<i64: 16, 384>}]} {
    %c0 = arith.constant 0 : index
    %c0_0 = arith.constant 0 : index
    %0 = vector.load %arg1[%c0, %c0_0] : memref<16x128xf32, #tpu.memory_space<vmem>>, vector<16x128xf32>
    %c0_1 = arith.constant 0 : index
    %c0_2 = arith.constant 0 : index
    %1 = vector.load %arg2[%c0_1, %c0_2] : memref<1x128xf32, #tpu.memory_space<vmem>>, vector<1x128xf32>
    %c0_3 = arith.constant 0 : index
    %c0_4 = arith.constant 0 : index
    %2 = vector.load %arg3[%c0_3, %c0_4] : memref<1x128xf32, #tpu.memory_space<vmem>>, vector<1x128xf32>
    %cst = arith.constant dense<0.000000e+00> : vector<16xf32>
    %3 = vector.multi_reduction <add>, %0, %cst [1] : vector<16x128xf32> to vector<16xf32>
    %4 = vector.shape_cast %3 : vector<16xf32> to vector<16x1xf32>
    %cst_5 = arith.constant 1.280000e+02 : f32
    %5 = vector.broadcast %cst_5 : f32 to vector<16x1xf32>
    %6 = arith.divf %4, %5 : vector<16x1xf32>
    %7 = vector.broadcast %6 : vector<16x1xf32> to vector<16x128xf32>
    %8 = arith.subf %0, %7 : vector<16x128xf32>
    %9 = arith.mulf %8, %8 : vector<16x128xf32>
    %cst_6 = arith.constant dense<0.000000e+00> : vector<16xf32>
    %10 = vector.multi_reduction <add>, %9, %cst_6 [1] : vector<16x128xf32> to vector<16xf32>
    %11 = vector.shape_cast %10 : vector<16xf32> to vector<16x1xf32>
    %cst_7 = arith.constant 1.280000e+02 : f32
    %12 = vector.broadcast %cst_7 : f32 to vector<16x1xf32>
    %13 = arith.divf %11, %12 : vector<16x1xf32>
    %14 = vector.broadcast %6 : vector<16x1xf32> to vector<16x128xf32>
    %15 = arith.subf %0, %14 : vector<16x128xf32>
    %cst_8 = arith.constant 9.99999974E-6 : f32
    %16 = vector.broadcast %cst_8 : f32 to vector<16x1xf32>
    %17 = arith.addf %13, %16 : vector<16x1xf32>
    %18 = math.rsqrt %17 : vector<16x1xf32>
    %19 = vector.broadcast %18 : vector<16x1xf32> to vector<16x128xf32>
    %20 = arith.mulf %15, %19 : vector<16x128xf32>
    %21 = vector.broadcast %1 : vector<1x128xf32> to vector<16x128xf32>
    %22 = arith.mulf %20, %21 : vector<16x128xf32>
    %23 = vector.broadcast %2 : vector<1x128xf32> to vector<16x128xf32>
    %24 = arith.addf %22, %23 : vector<16x128xf32>
    %c0_9 = arith.constant 0 : index
    %c0_10 = arith.constant 0 : index
    %25 = vector.load %arg6[%c0_9, %c0_10] : memref<16x128xf32, #tpu.memory_space<vmem>>, vector<16x128xf32>
    tpu.vector_store %arg6[%c0_9, %c0_10], %24 {strides = array<i32>} : memref<16x128xf32, #tpu.memory_space<vmem>>, vector<16x128xf32>,
    %26 = arith.truncf %24 : vector<16x128xf32> to vector<16x128xbf16>
    %c0_11 = arith.constant 0 : index
    %c0_12 = arith.constant 0 : index
    %27 = vector.load %arg4[%c0_11, %c0_12] : memref<128x384xbf16, #tpu.memory_space<vmem>>, vector<128x384xbf16>
    %cst_13 = arith.constant dense<0.000000e+00> : vector<16x384xf32>
    %28 = tpu.matmul %26, %27, %cst_13 {dimension_numbers = #tpu.dot_dimension_numbers<[1], [0], [0], [1], [0, 0, 1, 1], [], []>} : vector<16x128xbf16>, vector<128x384xbf16>, vector<16x384xf32> -> vector<16x384xf32>
    %c0_14 = arith.constant 0 : index
    %c0_15 = arith.constant 0 : index
    %29 = vector.load %arg5[%c0_14, %c0_15] : memref<1x384xf32, #tpu.memory_space<vmem>>, vector<1x384xf32>
    %30 = vector.broadcast %29 : vector<1x384xf32> to vector<16x384xf32>
    %31 = arith.addf %28, %30 : vector<16x384xf32>
    %c0_16 = arith.constant 0 : index
    %c0_17 = arith.constant 0 : index
    %32 = vector.load %arg7[%c0_16, %c0_17] : memref<16x384xf32, #tpu.memory_space<vmem>>, vector<16x384xf32>
    tpu.vector_store %arg7[%c0_16, %c0_17], %31 {strides = array<i32>} : memref<16x384xf32, #tpu.memory_space<vmem>>, vector<16x384xf32>,
    return
  }
  func.func @transform_0(%arg0: i32) -> (i32, i32) {
    %c0_i32 = arith.constant 0 : i32
    %c0_i32_0 = arith.constant 0 : i32
    return %arg0, %c0_i32 : i32, i32
  }
  func.func @transform_1(%arg0: i32) -> (i32, i32) {
    %c0_i32 = arith.constant 0 : i32
    %c0_i32_0 = arith.constant 0 : i32
    %c0_i32_1 = arith.constant 0 : i32
    return %c0_i32, %c0_i32_0 : i32, i32
  }
  func.func @transform_2(%arg0: i32) -> (i32, i32) {
    %c0_i32 = arith.constant 0 : i32
    %c0_i32_0 = arith.constant 0 : i32
    %c0_i32_1 = arith.constant 0 : i32
    return %c0_i32, %c0_i32_0 : i32, i32
  }
  func.func @transform_3(%arg0: i32) -> (i32, i32) {
    %c0_i32 = arith.constant 0 : i32
    %c0_i32_0 = arith.constant 0 : i32
    %c0_i32_1 = arith.constant 0 : i32
    return %c0_i32, %c0_i32_0 : i32, i32
  }
  func.func @transform_4(%arg0: i32) -> (i32, i32) {
    %c0_i32 = arith.constant 0 : i32
    %c0_i32_0 = arith.constant 0 : i32
    %c0_i32_1 = arith.constant 0 : i32
    return %c0_i32, %c0_i32_0 : i32, i32
  }
  func.func @transform_5(%arg0: i32) -> (i32, i32) {
    %c0_i32 = arith.constant 0 : i32
    %c0_i32_0 = arith.constant 0 : i32
    return %arg0, %c0_i32 : i32, i32
  }
  func.func @transform_6(%arg0: i32) -> (i32, i32) {
    %c0_i32 = arith.constant 0 : i32
    %c0_i32_0 = arith.constant 0 : i32
    return %arg0, %c0_i32 : i32, i32
  }
}

module attributes {stable_mosaic.version = 11 : i64} {
  func.func @mlp_res_kernel(%arg0: i32, %arg1: memref<16x128xf32, #tpu.memory_space<vmem>>, %arg2: memref<128x512xbf16, #tpu.memory_space<vmem>>, %arg3: memref<1x512xf32, #tpu.memory_space<vmem>>, %arg4: memref<1x512xf32, #tpu.memory_space<vmem>>, %arg5: memref<1x512xf32, #tpu.memory_space<vmem>>, %arg6: memref<512x128xbf16, #tpu.memory_space<vmem>>, %arg7: memref<1x128xf32, #tpu.memory_space<vmem>>, %arg8: memref<1x128xf32, #tpu.memory_space<vmem>>, %arg9: memref<1x128xf32, #tpu.memory_space<vmem>>, %arg10: memref<16x128xf32, #tpu.memory_space<vmem>>) attributes {dimension_semantics = [#tpu.dimension_semantics<parallel>], iteration_bounds = array<i64: 2>, scalar_prefetch = 0 : i64, scratch_operands = 0 : i64, tpu.core_type = #tpu.core_type<tc>, window_params = [{transform_indices = @transform_0, window_bounds = array<i64: 16, 128>}, {pipeline_mode = #tpu.pipeline_mode<synchronous>, transform_indices = @transform_1, window_bounds = array<i64: 128, 512>}, {pipeline_mode = #tpu.pipeline_mode<synchronous>, transform_indices = @transform_2, window_bounds = array<i64: 1, 512>}, {pipeline_mode = #tpu.pipeline_mode<synchronous>, transform_indices = @transform_3, window_bounds = array<i64: 1, 512>}, {pipeline_mode = #tpu.pipeline_mode<synchronous>, transform_indices = @transform_4, window_bounds = array<i64: 1, 512>}, {pipeline_mode = #tpu.pipeline_mode<synchronous>, transform_indices = @transform_5, window_bounds = array<i64: 512, 128>}, {pipeline_mode = #tpu.pipeline_mode<synchronous>, transform_indices = @transform_6, window_bounds = array<i64: 1, 128>}, {pipeline_mode = #tpu.pipeline_mode<synchronous>, transform_indices = @transform_7, window_bounds = array<i64: 1, 128>}, {pipeline_mode = #tpu.pipeline_mode<synchronous>, transform_indices = @transform_8, window_bounds = array<i64: 1, 128>}, {transform_indices = @transform_9, window_bounds = array<i64: 16, 128>}]} {
    %c0 = arith.constant 0 : index
    %c0_0 = arith.constant 0 : index
    %0 = vector.load %arg1[%c0, %c0_0] : memref<16x128xf32, #tpu.memory_space<vmem>>, vector<16x128xf32>
    %1 = arith.truncf %0 : vector<16x128xf32> to vector<16x128xbf16>
    %c0_1 = arith.constant 0 : index
    %c0_2 = arith.constant 0 : index
    %2 = vector.load %arg2[%c0_1, %c0_2] : memref<128x512xbf16, #tpu.memory_space<vmem>>, vector<128x512xbf16>
    %cst = arith.constant dense<0.000000e+00> : vector<16x512xf32>
    %3 = tpu.matmul %1, %2, %cst {dimension_numbers = #tpu.dot_dimension_numbers<[1], [0], [0], [1], [0, 0, 1, 1], [], []>} : vector<16x128xbf16>, vector<128x512xbf16>, vector<16x512xf32> -> vector<16x512xf32>
    %c0_3 = arith.constant 0 : index
    %c0_4 = arith.constant 0 : index
    %4 = vector.load %arg3[%c0_3, %c0_4] : memref<1x512xf32, #tpu.memory_space<vmem>>, vector<1x512xf32>
    %5 = vector.broadcast %4 : vector<1x512xf32> to vector<16x512xf32>
    %6 = arith.addf %3, %5 : vector<16x512xf32>
    %c0_5 = arith.constant 0 : index
    %c0_6 = arith.constant 0 : index
    %7 = vector.load %arg4[%c0_5, %c0_6] : memref<1x512xf32, #tpu.memory_space<vmem>>, vector<1x512xf32>
    %c0_7 = arith.constant 0 : index
    %c0_8 = arith.constant 0 : index
    %8 = vector.load %arg5[%c0_7, %c0_8] : memref<1x512xf32, #tpu.memory_space<vmem>>, vector<1x512xf32>
    %cst_9 = arith.constant dense<0.000000e+00> : vector<16xf32>
    %9 = vector.multi_reduction <add>, %6, %cst_9 [1] : vector<16x512xf32> to vector<16xf32>
    %10 = vector.shape_cast %9 : vector<16xf32> to vector<16x1xf32>
    %cst_10 = arith.constant 5.120000e+02 : f32
    %11 = vector.broadcast %cst_10 : f32 to vector<16x1xf32>
    %12 = arith.divf %10, %11 : vector<16x1xf32>
    %13 = vector.broadcast %12 : vector<16x1xf32> to vector<16x512xf32>
    %14 = arith.subf %6, %13 : vector<16x512xf32>
    %15 = arith.mulf %14, %14 : vector<16x512xf32>
    %cst_11 = arith.constant dense<0.000000e+00> : vector<16xf32>
    %16 = vector.multi_reduction <add>, %15, %cst_11 [1] : vector<16x512xf32> to vector<16xf32>
    %17 = vector.shape_cast %16 : vector<16xf32> to vector<16x1xf32>
    %cst_12 = arith.constant 5.120000e+02 : f32
    %18 = vector.broadcast %cst_12 : f32 to vector<16x1xf32>
    %19 = arith.divf %17, %18 : vector<16x1xf32>
    %20 = vector.broadcast %12 : vector<16x1xf32> to vector<16x512xf32>
    %21 = arith.subf %6, %20 : vector<16x512xf32>
    %cst_13 = arith.constant 9.99999974E-6 : f32
    %22 = vector.broadcast %cst_13 : f32 to vector<16x1xf32>
    %23 = arith.addf %19, %22 : vector<16x1xf32>
    %24 = math.rsqrt %23 : vector<16x1xf32>
    %25 = vector.broadcast %24 : vector<16x1xf32> to vector<16x512xf32>
    %26 = arith.mulf %21, %25 : vector<16x512xf32>
    %27 = vector.broadcast %7 : vector<1x512xf32> to vector<16x512xf32>
    %28 = arith.mulf %26, %27 : vector<16x512xf32>
    %29 = vector.broadcast %8 : vector<1x512xf32> to vector<16x512xf32>
    %30 = arith.addf %28, %29 : vector<16x512xf32>
    %cst_14 = arith.constant 5.000000e-01 : f32
    %31 = vector.broadcast %cst_14 : f32 to vector<16x512xf32>
    %32 = arith.mulf %31, %30 : vector<16x512xf32>
    %cst_15 = arith.constant 0.707106769 : f32
    %33 = vector.broadcast %cst_15 : f32 to vector<16x512xf32>
    %34 = arith.mulf %30, %33 : vector<16x512xf32>
    %35 = math.erf %34 : vector<16x512xf32>
    %cst_16 = arith.constant 1.000000e+00 : f32
    %36 = vector.broadcast %cst_16 : f32 to vector<16x512xf32>
    %37 = arith.addf %36, %35 : vector<16x512xf32>
    %38 = arith.mulf %32, %37 : vector<16x512xf32>
    %39 = arith.truncf %38 : vector<16x512xf32> to vector<16x512xbf16>
    %c0_17 = arith.constant 0 : index
    %c0_18 = arith.constant 0 : index
    %40 = vector.load %arg6[%c0_17, %c0_18] : memref<512x128xbf16, #tpu.memory_space<vmem>>, vector<512x128xbf16>
    %cst_19 = arith.constant dense<0.000000e+00> : vector<16x128xf32>
    %41 = tpu.matmul %39, %40, %cst_19 {dimension_numbers = #tpu.dot_dimension_numbers<[1], [0], [0], [1], [0, 0, 1, 1], [], []>} : vector<16x512xbf16>, vector<512x128xbf16>, vector<16x128xf32> -> vector<16x128xf32>
    %c0_20 = arith.constant 0 : index
    %c0_21 = arith.constant 0 : index
    %42 = vector.load %arg7[%c0_20, %c0_21] : memref<1x128xf32, #tpu.memory_space<vmem>>, vector<1x128xf32>
    %43 = vector.broadcast %42 : vector<1x128xf32> to vector<16x128xf32>
    %44 = arith.addf %41, %43 : vector<16x128xf32>
    %c0_22 = arith.constant 0 : index
    %c0_23 = arith.constant 0 : index
    %45 = vector.load %arg8[%c0_22, %c0_23] : memref<1x128xf32, #tpu.memory_space<vmem>>, vector<1x128xf32>
    %c0_24 = arith.constant 0 : index
    %c0_25 = arith.constant 0 : index
    %46 = vector.load %arg9[%c0_24, %c0_25] : memref<1x128xf32, #tpu.memory_space<vmem>>, vector<1x128xf32>
    %cst_26 = arith.constant dense<0.000000e+00> : vector<16xf32>
    %47 = vector.multi_reduction <add>, %44, %cst_26 [1] : vector<16x128xf32> to vector<16xf32>
    %48 = vector.shape_cast %47 : vector<16xf32> to vector<16x1xf32>
    %cst_27 = arith.constant 1.280000e+02 : f32
    %49 = vector.broadcast %cst_27 : f32 to vector<16x1xf32>
    %50 = arith.divf %48, %49 : vector<16x1xf32>
    %51 = vector.broadcast %50 : vector<16x1xf32> to vector<16x128xf32>
    %52 = arith.subf %44, %51 : vector<16x128xf32>
    %53 = arith.mulf %52, %52 : vector<16x128xf32>
    %cst_28 = arith.constant dense<0.000000e+00> : vector<16xf32>
    %54 = vector.multi_reduction <add>, %53, %cst_28 [1] : vector<16x128xf32> to vector<16xf32>
    %55 = vector.shape_cast %54 : vector<16xf32> to vector<16x1xf32>
    %cst_29 = arith.constant 1.280000e+02 : f32
    %56 = vector.broadcast %cst_29 : f32 to vector<16x1xf32>
    %57 = arith.divf %55, %56 : vector<16x1xf32>
    %58 = vector.broadcast %50 : vector<16x1xf32> to vector<16x128xf32>
    %59 = arith.subf %44, %58 : vector<16x128xf32>
    %cst_30 = arith.constant 9.99999974E-6 : f32
    %60 = vector.broadcast %cst_30 : f32 to vector<16x1xf32>
    %61 = arith.addf %57, %60 : vector<16x1xf32>
    %62 = math.rsqrt %61 : vector<16x1xf32>
    %63 = vector.broadcast %62 : vector<16x1xf32> to vector<16x128xf32>
    %64 = arith.mulf %59, %63 : vector<16x128xf32>
    %65 = vector.broadcast %45 : vector<1x128xf32> to vector<16x128xf32>
    %66 = arith.mulf %64, %65 : vector<16x128xf32>
    %67 = vector.broadcast %46 : vector<1x128xf32> to vector<16x128xf32>
    %68 = arith.addf %66, %67 : vector<16x128xf32>
    %69 = arith.addf %0, %68 : vector<16x128xf32>
    %c0_31 = arith.constant 0 : index
    %c0_32 = arith.constant 0 : index
    %70 = vector.load %arg10[%c0_31, %c0_32] : memref<16x128xf32, #tpu.memory_space<vmem>>, vector<16x128xf32>
    tpu.vector_store %arg10[%c0_31, %c0_32], %69 {strides = array<i32>} : memref<16x128xf32, #tpu.memory_space<vmem>>, vector<16x128xf32>,
    return
  }
  func.func @transform_0(%arg0: i32) -> (i32, i32) {
    %c0_i32 = arith.constant 0 : i32
    %c0_i32_0 = arith.constant 0 : i32
    return %arg0, %c0_i32 : i32, i32
  }
  func.func @transform_1(%arg0: i32) -> (i32, i32) {
    %c0_i32 = arith.constant 0 : i32
    %c0_i32_0 = arith.constant 0 : i32
    %c0_i32_1 = arith.constant 0 : i32
    return %c0_i32, %c0_i32_0 : i32, i32
  }
  func.func @transform_2(%arg0: i32) -> (i32, i32) {
    %c0_i32 = arith.constant 0 : i32
    %c0_i32_0 = arith.constant 0 : i32
    %c0_i32_1 = arith.constant 0 : i32
    return %c0_i32, %c0_i32_0 : i32, i32
  }
  func.func @transform_3(%arg0: i32) -> (i32, i32) {
    %c0_i32 = arith.constant 0 : i32
    %c0_i32_0 = arith.constant 0 : i32
    %c0_i32_1 = arith.constant 0 : i32
    return %c0_i32, %c0_i32_0 : i32, i32
  }
  func.func @transform_4(%arg0: i32) -> (i32, i32) {
    %c0_i32 = arith.constant 0 : i32
    %c0_i32_0 = arith.constant 0 : i32
    %c0_i32_1 = arith.constant 0 : i32
    return %c0_i32, %c0_i32_0 : i32, i32
  }
  func.func @transform_5(%arg0: i32) -> (i32, i32) {
    %c0_i32 = arith.constant 0 : i32
    %c0_i32_0 = arith.constant 0 : i32
    %c0_i32_1 = arith.constant 0 : i32
    return %c0_i32, %c0_i32_0 : i32, i32
  }
  func.func @transform_6(%arg0: i32) -> (i32, i32) {
    %c0_i32 = arith.constant 0 : i32
    %c0_i32_0 = arith.constant 0 : i32
    %c0_i32_1 = arith.constant 0 : i32
    return %c0_i32, %c0_i32_0 : i32, i32
  }
  func.func @transform_7(%arg0: i32) -> (i32, i32) {
    %c0_i32 = arith.constant 0 : i32
    %c0_i32_0 = arith.constant 0 : i32
    %c0_i32_1 = arith.constant 0 : i32
    return %c0_i32, %c0_i32_0 : i32, i32
  }
  func.func @transform_8(%arg0: i32) -> (i32, i32) {
    %c0_i32 = arith.constant 0 : i32
    %c0_i32_0 = arith.constant 0 : i32
    %c0_i32_1 = arith.constant 0 : i32
    return %c0_i32, %c0_i32_0 : i32, i32
  }
  func.func @transform_9(%arg0: i32) -> (i32, i32) {
    %c0_i32 = arith.constant 0 : i32
    %c0_i32_0 = arith.constant 0 : i32
    return %arg0, %c0_i32 : i32, i32
  }
}

module attributes {stable_mosaic.version = 11 : i64} {
  func.func @out_res_ln_kernel(%arg0: i32, %arg1: memref<16x128xf32, #tpu.memory_space<vmem>>, %arg2: memref<16x128xf32, #tpu.memory_space<vmem>>, %arg3: memref<128x128xbf16, #tpu.memory_space<vmem>>, %arg4: memref<1x128xf32, #tpu.memory_space<vmem>>, %arg5: memref<1x128xf32, #tpu.memory_space<vmem>>, %arg6: memref<1x128xf32, #tpu.memory_space<vmem>>, %arg7: memref<16x128xf32, #tpu.memory_space<vmem>>) attributes {dimension_semantics = [#tpu.dimension_semantics<parallel>], iteration_bounds = array<i64: 2>, scalar_prefetch = 0 : i64, scratch_operands = 0 : i64, tpu.core_type = #tpu.core_type<tc>, window_params = [{transform_indices = @transform_0, window_bounds = array<i64: 16, 128>}, {transform_indices = @transform_1, window_bounds = array<i64: 16, 128>}, {pipeline_mode = #tpu.pipeline_mode<synchronous>, transform_indices = @transform_2, window_bounds = array<i64: 128, 128>}, {pipeline_mode = #tpu.pipeline_mode<synchronous>, transform_indices = @transform_3, window_bounds = array<i64: 1, 128>}, {pipeline_mode = #tpu.pipeline_mode<synchronous>, transform_indices = @transform_4, window_bounds = array<i64: 1, 128>}, {pipeline_mode = #tpu.pipeline_mode<synchronous>, transform_indices = @transform_5, window_bounds = array<i64: 1, 128>}, {transform_indices = @transform_6, window_bounds = array<i64: 16, 128>}]} {
    %c0 = arith.constant 0 : index
    %c0_0 = arith.constant 0 : index
    %0 = vector.load %arg1[%c0, %c0_0] : memref<16x128xf32, #tpu.memory_space<vmem>>, vector<16x128xf32>
    %1 = arith.truncf %0 : vector<16x128xf32> to vector<16x128xbf16>
    %c0_1 = arith.constant 0 : index
    %c0_2 = arith.constant 0 : index
    %2 = vector.load %arg3[%c0_1, %c0_2] : memref<128x128xbf16, #tpu.memory_space<vmem>>, vector<128x128xbf16>
    %cst = arith.constant dense<0.000000e+00> : vector<16x128xf32>
    %3 = tpu.matmul %1, %2, %cst {dimension_numbers = #tpu.dot_dimension_numbers<[1], [0], [0], [1], [0, 0, 1, 1], [], []>} : vector<16x128xbf16>, vector<128x128xbf16>, vector<16x128xf32> -> vector<16x128xf32>
    %c0_3 = arith.constant 0 : index
    %c0_4 = arith.constant 0 : index
    %4 = vector.load %arg4[%c0_3, %c0_4] : memref<1x128xf32, #tpu.memory_space<vmem>>, vector<1x128xf32>
    %5 = vector.broadcast %4 : vector<1x128xf32> to vector<16x128xf32>
    %6 = arith.addf %3, %5 : vector<16x128xf32>
    %c0_5 = arith.constant 0 : index
    %c0_6 = arith.constant 0 : index
    %7 = vector.load %arg2[%c0_5, %c0_6] : memref<16x128xf32, #tpu.memory_space<vmem>>, vector<16x128xf32>
    %8 = arith.addf %7, %6 : vector<16x128xf32>
    %c0_7 = arith.constant 0 : index
    %c0_8 = arith.constant 0 : index
    %9 = vector.load %arg5[%c0_7, %c0_8] : memref<1x128xf32, #tpu.memory_space<vmem>>, vector<1x128xf32>
    %c0_9 = arith.constant 0 : index
    %c0_10 = arith.constant 0 : index
    %10 = vector.load %arg6[%c0_9, %c0_10] : memref<1x128xf32, #tpu.memory_space<vmem>>, vector<1x128xf32>
    %cst_11 = arith.constant dense<0.000000e+00> : vector<16xf32>
    %11 = vector.multi_reduction <add>, %8, %cst_11 [1] : vector<16x128xf32> to vector<16xf32>
    %12 = vector.shape_cast %11 : vector<16xf32> to vector<16x1xf32>
    %cst_12 = arith.constant 1.280000e+02 : f32
    %13 = vector.broadcast %cst_12 : f32 to vector<16x1xf32>
    %14 = arith.divf %12, %13 : vector<16x1xf32>
    %15 = vector.broadcast %14 : vector<16x1xf32> to vector<16x128xf32>
    %16 = arith.subf %8, %15 : vector<16x128xf32>
    %17 = arith.mulf %16, %16 : vector<16x128xf32>
    %cst_13 = arith.constant dense<0.000000e+00> : vector<16xf32>
    %18 = vector.multi_reduction <add>, %17, %cst_13 [1] : vector<16x128xf32> to vector<16xf32>
    %19 = vector.shape_cast %18 : vector<16xf32> to vector<16x1xf32>
    %cst_14 = arith.constant 1.280000e+02 : f32
    %20 = vector.broadcast %cst_14 : f32 to vector<16x1xf32>
    %21 = arith.divf %19, %20 : vector<16x1xf32>
    %22 = vector.broadcast %14 : vector<16x1xf32> to vector<16x128xf32>
    %23 = arith.subf %8, %22 : vector<16x128xf32>
    %cst_15 = arith.constant 9.99999974E-6 : f32
    %24 = vector.broadcast %cst_15 : f32 to vector<16x1xf32>
    %25 = arith.addf %21, %24 : vector<16x1xf32>
    %26 = math.rsqrt %25 : vector<16x1xf32>
    %27 = vector.broadcast %26 : vector<16x1xf32> to vector<16x128xf32>
    %28 = arith.mulf %23, %27 : vector<16x128xf32>
    %29 = vector.broadcast %9 : vector<1x128xf32> to vector<16x128xf32>
    %30 = arith.mulf %28, %29 : vector<16x128xf32>
    %31 = vector.broadcast %10 : vector<1x128xf32> to vector<16x128xf32>
    %32 = arith.addf %30, %31 : vector<16x128xf32>
    %c0_16 = arith.constant 0 : index
    %c0_17 = arith.constant 0 : index
    %33 = vector.load %arg7[%c0_16, %c0_17] : memref<16x128xf32, #tpu.memory_space<vmem>>, vector<16x128xf32>
    tpu.vector_store %arg7[%c0_16, %c0_17], %32 {strides = array<i32>} : memref<16x128xf32, #tpu.memory_space<vmem>>, vector<16x128xf32>,
    return
  }
  func.func @transform_0(%arg0: i32) -> (i32, i32) {
    %c0_i32 = arith.constant 0 : i32
    %c0_i32_0 = arith.constant 0 : i32
    return %arg0, %c0_i32 : i32, i32
  }
  func.func @transform_1(%arg0: i32) -> (i32, i32) {
    %c0_i32 = arith.constant 0 : i32
    %c0_i32_0 = arith.constant 0 : i32
    return %arg0, %c0_i32 : i32, i32
  }
  func.func @transform_2(%arg0: i32) -> (i32, i32) {
    %c0_i32 = arith.constant 0 : i32
    %c0_i32_0 = arith.constant 0 : i32
    %c0_i32_1 = arith.constant 0 : i32
    return %c0_i32, %c0_i32_0 : i32, i32
  }
  func.func @transform_3(%arg0: i32) -> (i32, i32) {
    %c0_i32 = arith.constant 0 : i32
    %c0_i32_0 = arith.constant 0 : i32
    %c0_i32_1 = arith.constant 0 : i32
    return %c0_i32, %c0_i32_0 : i32, i32
  }
  func.func @transform_4(%arg0: i32) -> (i32, i32) {
    %c0_i32 = arith.constant 0 : i32
    %c0_i32_0 = arith.constant 0 : i32
    %c0_i32_1 = arith.constant 0 : i32
    return %c0_i32, %c0_i32_0 : i32, i32
  }
  func.func @transform_5(%arg0: i32) -> (i32, i32) {
    %c0_i32 = arith.constant 0 : i32
    %c0_i32_0 = arith.constant 0 : i32
    %c0_i32_1 = arith.constant 0 : i32
    return %c0_i32, %c0_i32_0 : i32, i32
  }
  func.func @transform_6(%arg0: i32) -> (i32, i32) {
    %c0_i32 = arith.constant 0 : i32
    %c0_i32_0 = arith.constant 0 : i32
    return %arg0, %c0_i32 : i32, i32
  }
}

</mosaic_0001>

<bundles_post_ra>
// kernel: tpu_custom_call.1
= control target key start
LH: loop header
LB: loop body
LE: loop exit
PB: predicated region body
PF: predicated region fallthrough
CT: control target
= control target key end

     0   :  { %7 = vsyncpa [#allocation3], 0  ;;  %s690_s0 = inlined_call_operand.hbm [shape: f32[16,128], index: 0, kind: input, shape index: {}]   ;;  %s691_s1 = inlined_call_operand.hbm [shape: f32[8,128], index: 1, kind: input, shape index: {}]   ;;  %s692_s2 = inlined_call_operand.hbm [shape: f32[16,128], index: 2, kind: output, shape index: {}]  }
   0x1   :  { %9 = vsyncpa [#allocation3 + $0x1], 0 }
   0x2   :  { %10 = vsyncpa [#allocation6], 0 }
   0x3   :  { %11 = vsyncpa [#allocation4], 0 }
   0x4   :  { %13 = vsyncpa [#allocation4 + $0x1], 0  ;;  %s489_s9 = smov 0   ;;  %s491_s10 = smov 0  }
   0x5   :  { %s493_s11 = smov 0   ;;  %s495_s12 = smov 0  }
   0x6 LB: > { %s510_s13 = sadd.s32 4294967295, %s469_s12   ;;  %s270_s14 = sadd.s32 4294967294, %s469_s12   ;;  %s469_s12 = sphi %s495_s12, %s716_s12   ;;  %s465_s11 = sphi %s493_s11, %s715_s11   ;;  %s461_s10 = sphi %s491_s10, %s714_s10   ;;  %s457_s9 = sphi %s489_s9, %s713_s9  }
   0x7   : > { %p39_p0 = scmp.ne.s32.totalorder %s461_s10, %s457_s9  ;;  %p693_p1 = scmp.eq.s32.totalorder %s510_s13, 0 }
   0x8   : > { %p90_p3 = scmp.eq.s32.totalorder %s270_s14, 1  ;;  %p271_p5 = scmp.ge.s32.totalorder %s469_s12, 1 }
   0x9   : > { %p519_p4 = por %p693_p1, %p39_p0  ;;  %p97_p7 = scmp.lt.s32.totalorder %s469_s12, 3 }
   0xa   : > { %p524_p6 = por %p90_p3, %p39_p0  ;;  %s471_s18 = smov [#allocation5]  }
   0xb   : > { %s696_s15 = scalar_select %p519_p4, 1, 0 }
   0xc   : > { %s697_s16 = scalar_select %p524_p6, 1, 0 }
   0xd   : > { %p529_p8 = pnand %p271_p5, %p97_p7  ;;  %s110_s19 = sshll.u32 %s471_s18, 4  ;;  %s111_s19 = int_to_ptr.vmem [resolvable:$true] %s110_s19 }
   0xe   : > { %s537_s20 = sadd.s32 1, %s469_s12   ;;  %s26_s24 = sadd.s32 1, %s465_s11 }
   0xf   : > { %s698_s17 = scalar_select %p529_p8, 1, 0 }
  0x10   : > { %p292_p10 = pneg %p529_p8  ;;  %s23_s22 = ssub.s32 %s469_s12, %s537_s20 }
  0x11   : > { %p547_p12 = scmp.eq.s32.totalorder %s23_s22, 0  ;;  %s341_s27 = scalar_lea.hbm %s691_s1, 128 }
  0x12   : > { %p541_p11 = pnand %p292_p10, %p693_p1  ;;  %p342_p0 = scmp.ne.s32.totalorder %s691_s1, %s341_s27 }
  0x13   : > { %s700_s23 = scalar_select %p547_p12, 1, 0 }
  0x14   : > { %p343_p3 = pneg %p541_p11  ;;  %p348_p10 = scmp.lt.u32.totalorder %s341_s27, %s691_s1 }
  0x16   : > { %p344_p5 = pnand %p343_p3, %p342_p0 }
  0x18   : > { %p345_p7 = pneg %p344_p5 }
  0x1a   : > { %p350_p9 = pnand %p348_p10, %p345_p7 }
  0x1c   : > { %353 = shalt.err (!%p350_p9)
}
  0x1d   : > { %s354_s4 = scalar_lea.vmem %s111_s19, 128  ;;  %p362_p6 = scmp.lt.s32.totalorder %s111_s19, %s111_s19 }
  0x1e   : > { %p355_p1 = scmp.ne.s32.totalorder %s111_s19, %s354_s4  ;;  %p363_p4 = scmp.lt.s32.totalorder %s354_s4, %s354_s4 }
  0x20   : > { %p357_p2 = pnand %p355_p1, %p343_p3  ;;  %p364_p8 = por %p363_p4, %p362_p6 }
  0x22   : > { %p358_p13 = pneg %p357_p2 }
  0x24   : > { %p365_p12 = pnand %p364_p8, %p358_p13 }
  0x26   : > { %368 = shalt.err (!%p365_p12)
}
  0x27   : > { %295 = dma.hbm_to_vmem [thread:$0]  (!%p541_p11), %s691_s1, 128, %s111_s19, [#allocation6]  }
  0x28   : > { %p701_p1 = scmp.ne.s32.totalorder %s700_s23, 0  ;;  %p34_p2 = scmp.eq.s32.totalorder %s469_s12, 0 }
  0x29   : > { %p702_p4 = scmp.ne.s32.totalorder %s465_s11, %s461_s10  ;;  %p703_p6 = scmp.eq.s32.totalorder %s510_s13, 1 }
  0x2a   : > { %s573_s7 = scalar_select %p701_p1, %s465_s11, %s26_s24  }
  0x2b   : > { %p581_p8 = por %p703_p6, %p702_p4  ;;  %p305_p9 = scmp.lt.s32.totalorder %s469_s12, 2 }
  0x2c   : > { %s121_s14 = sand.u32 1, %s465_s11   ;;  %p705_p12 = pmov %p702_p4 }
  0x2d   : > { %s274_s18 = sshll.u32 %s121_s14, 3  ;;  %s275_s21 = sshll.u32 %s469_s12, 7 }
  0x2e   : > { %p35_p13 = por %p34_p2, %p705_p12  ;;  %s594_s19 = scalar_lea.hbm %s690_s0, %s275_s21 }
  0x2f   : > { %s125_s23 = scalar_lea.vmem [#allocation2], %s274_s18  ;;  %s122_s27 = scalar_lea.sflag [#allocation3], %s121_s14 }
  0x30   : > { %s132_s24 = sshll.u32 %s125_s23, 4  ;;  %p596_p11 = pnand %p305_p9, %p35_p13  ;;  %s600_s24 = int_to_ptr.vmem [resolvable:$true] %s132_s24 }
  0x31   : > { %s369_s28 = scalar_lea.hbm %s594_s19, 128  ;;  %s374_s3 = scalar_lea.hbm %s690_s0, 256 }
  0x32   : > { %p370_p0 = scmp.ne.s32.totalorder %s594_s19, %s369_s28  ;;  %p371_p3 = pneg %p596_p11 }
  0x33   : > { %p375_p10 = scmp.lt.u32.totalorder %s594_s19, %s690_s0  ;;  %p376_p1 = scmp.lt.u32.totalorder %s374_s3, %s369_s28 }
  0x34   : > { %p372_p5 = pnand %p371_p3, %p370_p0  ;;  %p378_p4 = scmp.lt.u32.totalorder %s369_s28, %s594_s19 }
  0x35   : > { %p377_p2 = por %p376_p1, %p375_p10 }
  0x36   : > { %p373_p7 = pneg %p372_p5 }
  0x37   : > { %p379_p6 = por %p378_p4, %p377_p2 }
  0x39   : > { %p380_p9 = pnand %p379_p6, %p373_p7 }
  0x3b   : > { %383 = shalt.err (!%p380_p9)
}
  0x3c   : > { %s384_s6 = scalar_lea.vmem %s600_s24, 128  ;;  %s472_s14 = smov [#allocation2]  }
  0x3d   : > { %p385_p12 = scmp.ne.s32.totalorder %s600_s24, %s384_s6  ;;  %s389_s18 = sshll.u32 %s472_s14, 4  ;;  %s390_s18 = int_to_ptr.vmem [resolvable:$false] %s389_s18 }
  0x3e   : > { %s391_s21 = scalar_lea.vmem %s390_s18, 256  ;;  %p392_p5 = scmp.lt.s32.totalorder %s600_s24, %s390_s18 }
  0x3f   : > { %p387_p13 = pnand %p385_p12, %p371_p3  ;;  %p393_p10 = scmp.lt.s32.totalorder %s391_s21, %s384_s6 }
  0x41   : > { %p388_p0 = pneg %p387_p13  ;;  %p394_p1 = por %p393_p10, %p392_p5 }
  0x43   : > { %p395_p2 = pnand %p394_p1, %p388_p0 }
  0x45   : > { %398 = shalt.err (!%p395_p2)
}
  0x46   : > { %299 = dma.hbm_to_vmem [thread:$0]  (!%p596_p11), %s594_s19, 128, %s600_s24, %s122_s27  }
  0x47   : > { %p707_p7 = scmp.ne.s32.totalorder %s698_s17, 0 }
  0x48   : > { %s630_s22 = sand.u32 (!%p707_p7), 1, %s461_s10   ;;  %p708_p3 = scmp.ne.s32.totalorder (!%p707_p7), %s696_s15, 0 }
  0x49   : > { %141 = sbr.rel (%p707_p7) target bundleno = 109 (0x6d), region = 28  ;;  %s277_s25 = sshll.u32 (!%p707_p7), %s630_s22, 3 }
  0x4a   : > { %s144_s23 = scalar_lea.sflag (!%p707_p7), [#allocation3], %s630_s22  ;;  %s147_s28 = scalar_lea.vmem (!%p707_p7), [#allocation2], %s277_s25 }
  0x50   : > { %444 = dma.done.wait (%p708_p3), %s144_s23, 128  }
  0x51   : > { %446 = vsyncadd (%p708_p3), %s144_s23, 4294967168  ;;  %p709_p4 = scmp.eq.s32.totalorder %s510_s13, 0 }
  0x53   : > { %448 = dma.done.wait (%p709_p4), [#allocation6], 128   ;;  %p710_p11 = pmov %p709_p4 }
  0x54   : > { %s171_s17 = scalar_lea.vmem [#allocation7], %s277_s25  ;;  %s281_s24 = sshll.u32 %s510_s13, 7  ;;  %v172_v0 = vld [vmem:[%s147_s28] sm:$0xff]  ;;  %v173_v1 = vld [vmem:[#allocation5] sm:$0xff] }
  0x55   : > { %450 = vsyncadd (%p710_p11), [#allocation6], 4294967168  ;;  %s190_s19 = sshll.u32 %s171_s17, 4  ;;  %v174_v2 = vadd.f32 %v173_v1, %v172_v0  ;;  %s648_s27 = scalar_lea.hbm %s692_s2, %s281_s24  ;;  %s643_s19 = int_to_ptr.vmem [resolvable:$true] %s190_s19 }
  0x56   : > { %s177_s29 = scalar_lea.sflag [#allocation4], %s630_s22  ;;  %s399_s30 = scalar_lea.vmem %s643_s19, 128 }
  0x57   : > { %175 = vst [vmem:[%s171_s17] sm:$0xff] %v174_v2  ;;  %p400_p6 = scmp.ne.s32.totalorder %s643_s19, %s399_s30  ;;  %s473_s13 = smov [#allocation7]  }
  0x58   : > { %s403_s3 = sshll.u32 %s473_s13, 4  ;;  %s404_s3 = int_to_ptr.vmem [resolvable:$false] %s403_s3 }
  0x59   : > { %p401_p9 = pnand %p400_p6, %p581_p8  ;;  %s405_s4 = scalar_lea.vmem %s404_s3, 256 }
  0x5a   : > { %p406_p13 = scmp.lt.s32.totalorder %s643_s19, %s404_s3  ;;  %p407_p0 = scmp.lt.s32.totalorder %s405_s4, %s399_s30 }
  0x5b   : > { %p402_p12 = pneg %p401_p9 }
  0x5c   : > { %p408_p5 = por %p407_p0, %p406_p13 }
  0x5e   : > { %p409_p10 = pnand %p408_p5, %p402_p12 }
  0x60   : > { %412 = shalt.err (!%p409_p10)
}
  0x61   : > { %s413_s5 = scalar_lea.hbm %s648_s27, 128  ;;  %s417_s18 = scalar_lea.hbm %s692_s2, 256 }
  0x62   : > { %p414_p1 = scmp.ne.s32.totalorder %s648_s27, %s413_s5  ;;  %p418_p3 = scmp.lt.u32.totalorder %s648_s27, %s692_s2 }
  0x63   : > { %p419_p4 = scmp.lt.u32.totalorder %s417_s18, %s413_s5  ;;  %p421_p6 = scmp.lt.u32.totalorder %s413_s5, %s648_s27 }
  0x64   : > { %p415_p2 = pnand %p414_p1, %p581_p8 }
  0x65   : > { %p420_p11 = por %p419_p4, %p418_p3 }
  0x66   : > { %p416_p7 = pneg %p415_p2 }
  0x67   : > { %p422_p9 = por %p421_p6, %p420_p11 }
  0x69   : > { %p423_p12 = pnand %p422_p9, %p416_p7 }
  0x6b   : > { %426 = shalt.err (!%p423_p12)
}
  0x6c   : > { %290 = dma.vmem_to_hbm [thread:$0]  (%p581_p8), %s643_s19, 128, %s648_s27, %s177_s29  }
  0x6d PF: > { %s202_s25 = sand.u32 1, %s457_s9   ;;  %p711_p13 = scmp.ne.s32.totalorder %s697_s16, 0 }
  0x6e   : > { %p712_p0 = scmp.ge.s32.totalorder %s469_s12, 2  ;;  %s203_s23 = scalar_lea.sflag [#allocation4], %s202_s25 }
  0x70   : > { %p301_p5 = pnand %p712_p0, %p711_p13 }
  0x72   : > { %452 = dma.done.wait (!%p301_p5), %s203_s23, 128  }
  0x73   : > { %454 = vsyncadd (!%p301_p5), %s203_s23, 4294967168  ;;  %p16_p10 = scmp.ge.s32.totalorder %s537_s20, 4   ;;  %s713_s9 = smov %s461_s10 }
  0x74   : > { %s714_s10 = smov %s465_s11  ;;  %s715_s11 = smov %s573_s7 }
  0x75   : > { %s716_s12 = smov %s537_s20  ;;  %18 = sbr.rel (!%p16_p10) target bundleno = 6 (0x6), region = 77 }
  0x7c   :  { %208 = vsyncpa [#allocation3], 1 }
  0x7d   :  { %210 = vsyncpa [#allocation3 + $0x1], 1 }
  0x7e   :  { %211 = vsyncpa [#allocation6], 1 }
  0x7f   :  { %212 = vsyncpa [#allocation4], 1 }
  0x80   :  { %214 = vsyncpa [#allocation4 + $0x1], 1 }

// kernel: squeeze.29
= control target key start
LH: loop header
LB: loop body
LE: loop exit
PB: predicated region body
PF: predicated region fallthrough
CT: control target
= control target key end

     0   :  { %vm3_vm0 = vcmask 261120   ;;  %s196_s10 = smov 96   ;;  %s197_s11 = smov 32   ;;  %s278_s0 = inlined_call_operand.vmem [shape: f32[1,2,8,128], index: 0, kind: input, shape index: {}]   ;;  %s279_s1 = inlined_call_operand.vmem [shape: f32[2,8,4,32], index: 1, kind: output, shape index: {}]  }
   0x1   :  { %v30_v0 = vld [vmem:[%s278_s0] sm:$0xff]   ;;  %v175_v1 = vld [vmem:[%s278_s0 + $0x8] sm:$0xff]   ;;  %s195_s0 = smov 64  }
   0x2   :  { %31 = vrot.lane.b32.xlu1 %v30_v0, %s195_s0  ;;  %14 = vrot.lane.b32.xlu0 %v30_v0, %s196_s10  ;;  %10 = vst.msk [vmem:[#allocation0 + $0x40] ss:$8 sm:$0xf] %vm3_vm0, %v175_v1   ;;  %12 = vst.msk [vmem:[#allocation0 + $0x40] ss:$8 sm:$0xf0] %vm3_vm0, %v175_v1  }
   0x3   :  { %4 = vst.msk [vmem:[#allocation0] ss:$8 sm:$0xf] %vm3_vm0, %v30_v0   ;;  %5 = vst.msk [vmem:[#allocation0] ss:$8 sm:$0xf0] %vm3_vm0, %v30_v0  }
   0x6   :  { %40 = vrot.lane.b32.xlu1 %v175_v1, %s195_s0  ;;  %23 = vrot.lane.b32.xlu0 %v175_v1, %s196_s10 }
   0xa   :  { %57 = vrot.lane.b32.xlu1 %v175_v1, %s197_s11  ;;  %48 = vrot.lane.b32.xlu0 %v30_v0, %s197_s11 }
  0x74   :  { %v32_v2 = vpop.permute.xlu1 %31   ;;  %v15_v3 = vpop.permute.xlu0 %14  }
  0x75   :  { %35 = vst.msk [vmem:[#allocation0 + $0x2] ss:$8 sm:$0xf] %vm3_vm0, %v32_v2   ;;  %37 = vst.msk [vmem:[#allocation0 + $0x2] ss:$8 sm:$0xf0] %vm3_vm0, %v32_v2  }
  0x76   :  { %18 = vst.msk [vmem:[#allocation0 + $0x1] ss:$8 sm:$0xf] %vm3_vm0, %v15_v3   ;;  %20 = vst.msk [vmem:[#allocation0 + $0x1] ss:$8 sm:$0xf0] %vm3_vm0, %v15_v3  }
  0x78   :  { %v41_v4 = vpop.permute.xlu1 %40   ;;  %v24_v5 = vpop.permute.xlu0 %23  }
  0x79   :  { %44 = vst.msk [vmem:[#allocation0 + $0x42] ss:$8 sm:$0xf] %vm3_vm0, %v41_v4   ;;  %46 = vst.msk [vmem:[#allocation0 + $0x42] ss:$8 sm:$0xf0] %vm3_vm0, %v41_v4  }
  0x7a   :  { %27 = vst.msk [vmem:[#allocation0 + $0x41] ss:$8 sm:$0xf] %vm3_vm0, %v24_v5   ;;  %29 = vst.msk [vmem:[#allocation0 + $0x41] ss:$8 sm:$0xf0] %vm3_vm0, %v24_v5  }
  0x7c   :  { %v58_v6 = vpop.permute.xlu1 %57   ;;  %v49_v7 = vpop.permute.xlu0 %48  }
  0x7d   :  { %61 = vst.msk [vmem:[#allocation0 + $0x43] ss:$8 sm:$0xf] %vm3_vm0, %v58_v6   ;;  %63 = vst.msk [vmem:[#allocation0 + $0x43] ss:$8 sm:$0xf0] %vm3_vm0, %v58_v6  }
  0x7e   :  { %52 = vst.msk [vmem:[#allocation0 + $0x3] ss:$8 sm:$0xf] %vm3_vm0, %v49_v7   ;;  %54 = vst.msk [vmem:[#allocation0 + $0x3] ss:$8 sm:$0xf0] %vm3_vm0, %v49_v7  }
  0x84   :  { %v112_v8 = vld [vmem:[#allocation0 + $0x40] sm:$0xf]  ;;  %v118_v9 = vld [vmem:[#allocation0 + $0x48] sm:$0xf]  ;;  %v124_v10 = vld [vmem:[#allocation0 + $0x50] sm:$0xf] }
  0x85   :  { %184 = vst [vmem:[%s279_s1 + $0x20] sm:$0xf] %v112_v8  ;;  %185 = vst [vmem:[%s279_s1 + $0x24] sm:$0xf] %v118_v9  ;;  %v130_v11 = vld [vmem:[#allocation0 + $0x58] sm:$0xf] }
  0x86   :  { %186 = vst [vmem:[%s279_s1 + $0x28] sm:$0xf] %v124_v10  ;;  %v136_v12 = vld [vmem:[#allocation0 + $0x60] sm:$0xf]  ;;  %v142_v13 = vld [vmem:[#allocation0 + $0x68] sm:$0xf] }
  0x87   :  { %187 = vst [vmem:[%s279_s1 + $0x2c] sm:$0xf] %v130_v11  ;;  %188 = vst [vmem:[%s279_s1 + $0x30] sm:$0xf] %v136_v12  ;;  %v148_v14 = vld [vmem:[#allocation0 + $0x70] sm:$0xf] }
  0x88   :  { %189 = vst [vmem:[%s279_s1 + $0x34] sm:$0xf] %v142_v13  ;;  %v154_v15 = vld [vmem:[#allocation0 + $0x78] sm:$0xf]  ;;  %v67_v16 = vld [vmem:[#allocation0] sm:$0xf] }
  0x89   :  { %190 = vst [vmem:[%s279_s1 + $0x38] sm:$0xf] %v148_v14  ;;  %191 = vst [vmem:[%s279_s1 + $0x3c] sm:$0xf] %v154_v15  ;;  %v71_v17 = vld [vmem:[#allocation0 + $0x8] sm:$0xf] }
  0x8a   :  { %69 = vst [vmem:[%s279_s1] sm:$0xf] %v67_v16  ;;  %v76_v18 = vld [vmem:[#allocation0 + $0x10] sm:$0xf]  ;;  %v82_v19 = vld [vmem:[#allocation0 + $0x18] sm:$0xf] }
  0x8b   :  { %177 = vst [vmem:[%s279_s1 + $0x4] sm:$0xf] %v71_v17  ;;  %178 = vst [vmem:[%s279_s1 + $0x8] sm:$0xf] %v76_v18  ;;  %v88_v20 = vld [vmem:[#allocation0 + $0x20] sm:$0xf] }
  0x8c   :  { %179 = vst [vmem:[%s279_s1 + $0xc] sm:$0xf] %v82_v19  ;;  %v94_v21 = vld [vmem:[#allocation0 + $0x28] sm:$0xf]  ;;  %v100_v22 = vld [vmem:[#allocation0 + $0x30] sm:$0xf] }
  0x8d   :  { %180 = vst [vmem:[%s279_s1 + $0x10] sm:$0xf] %v88_v20  ;;  %181 = vst [vmem:[%s279_s1 + $0x14] sm:$0xf] %v94_v21  ;;  %v106_v23 = vld [vmem:[#allocation0 + $0x38] sm:$0xf] }
  0x8e   :  { %182 = vst [vmem:[%s279_s1 + $0x18] sm:$0xf] %v100_v22  ;;  %183 = vst [vmem:[%s279_s1 + $0x1c] sm:$0xf] %v106_v23 }

// kernel: _block_forward_jit.3
= control target key start
LH: loop header
LB: loop body
LE: loop exit
PB: predicated region body
PF: predicated region fallthrough
CT: control target
= control target key end

     0   :  { %s839_s21 = smov 0   ;;  %s967_s0 = inlined_call_operand.vmem [shape: f32[32,128], index: 0, kind: input, shape index: {}]   ;;  %s968_s1 = inlined_call_operand.vmem [shape: f32[1,128], index: 1, kind: input, shape index: {}]   ;;  %s969_s2 = inlined_call_operand.vmem [shape: f32[1,128], index: 2, kind: input, shape index: {}]   ;;  %s970_s3 = inlined_call_operand.vmem [shape: bf16[128,384], index: 3, kind: input, shape index: {}]   ;;  %s971_s4 = inlined_call_operand.vmem [shape: f32[1,384], index: 4, kind: input, shape index: {}]   ;;  %s972_s5 = inlined_call_operand.vmem [shape: f32[32,128], index: 5, kind: output, shape index: {0}]   ;;  %s973_s6 = inlined_call_operand.vmem [shape: f32[32,384], index: 6, kind: output, shape index: {1}]  }
   0x1 LB: > { %s677_s22 = sadd.s32 4294967295, %s799_s21   ;;  %p681_p0 = scmp.ge.s32.totalorder %s799_s21, 1  ;;  %s799_s21 = sphi %s839_s21, %s17_s21  }
   0x2   : > { %p216_p1 = scmp.lt.s32.totalorder %s799_s21, 3 }
   0x4   : > { %p217_p2 = pnand %p681_p0, %p216_p1 }
   0x5   : > { %s682_s23 = sshll.u32 (!%p217_p2), %s677_s22, 1  ;;  %v757_v2 = vld [vmem:[%s970_s3 + $0x4] ss:$12 sps:$4 sm:$0xff] (!%p217_p2)   ;;  %v759_v3 = vld [vmem:[%s970_s3] ss:$12 sps:$4 sm:$0xff] (!%p217_p2)   ;;  %v801_v4 = vmov (!%p217_p2), 0.0   ;;  %v352_v53 = vlaneseq (!%p217_p2) }
   0x6   : > { %220 = sbr.rel (%p217_p2) target bundleno = 552 (0x228), region = 40  ;;  %p253_p3 = scmp.lt.s32.totalorder (!%p217_p2), %s682_s23, 3  ;;  %725 = vmatprep.subr.bf16.mxu1 (!%p217_p2), %v801_v4  ;;  %v760_v5 = vld [vmem:[%s970_s3 + $0x8] ss:$12 sps:$4 sm:$0xff] (!%p217_p2)   ;;  %495 = vmatprep.subr.bf16.mxu0 (!%p217_p2), %v757_v2  ;;  %v763_v15 = vld [vmem:[%s970_s3 + $0x18] ss:$12 sps:$4 sm:$0xff] (!%p217_p2)  }
   0x7   : > { %v761_v6 = vld [vmem:[%s970_s3 + $0x1c] ss:$12 sps:$4 sm:$0xff] (!%p217_p2)   ;;  %496 = vmatpush1.bf16.msra.mxu0 (!%p217_p2), %v759_v3  ;;  %726 = vmatpush3.bf16.msra.mxu1 (!%p217_p2), %v760_v5  ;;  %v764_v16 = vld [vmem:[%s970_s3 + $0x20] ss:$12 sps:$4 sm:$0xff] (!%p217_p2)   ;;  %v768_v19 = vld [vmem:[%s970_s3 + $0x38] ss:$12 sps:$4 sm:$0xff] (!%p217_p2)  }
   0x8   : > { %497 = vmatprep.subr.bf16.mxu0 (!%p217_p2), %v761_v6  ;;  %727 = vmatprep.subr.bf16.mxu1 (!%p217_p2), %v801_v4  ;;  %v765_v17 = vld [vmem:[%s970_s3 + $0x34] ss:$12 sps:$4 sm:$0xff] (!%p217_p2)   ;;  %v767_v18 = vld [vmem:[%s970_s3 + $0x30] ss:$12 sps:$4 sm:$0xff] (!%p217_p2)   ;;  %v769_v20 = vld [vmem:[%s970_s3 + $0x4c] ss:$12 sps:$4 sm:$0xff] (!%p217_p2)  }
   0x9   : > { %v771_v21 = vld [vmem:[%s970_s3 + $0x48] ss:$12 sps:$4 sm:$0xff] (!%p217_p2)   ;;  %v772_v22 = vld [vmem:[%s970_s3 + $0x50] ss:$12 sps:$4 sm:$0xff] (!%p217_p2)   ;;  %v775_v24 = vld [vmem:[%s970_s3 + $0x60] ss:$12 sps:$4 sm:$0xff] (!%p217_p2)  }
   0xa   : > { %v773_v23 = vld [vmem:[%s970_s3 + $0x64] ss:$12 sps:$4 sm:$0xff] (!%p217_p2)   ;;  %v776_v25 = vld [vmem:[%s970_s3 + $0x68] ss:$12 sps:$4 sm:$0xff] (!%p217_p2)   ;;  %v780_v28 = vld [vmem:[%s970_s3 + $0x80] ss:$12 sps:$4 sm:$0xff] (!%p217_p2)  }
   0xb   : > { %498 = vmatpush1.bf16.msra.mxu0 (!%p217_p2), %v763_v15  ;;  %728 = vmatpush3.bf16.msra.mxu1 (!%p217_p2), %v764_v16  ;;  %v777_v26 = vld [vmem:[%s970_s3 + $0x7c] ss:$12 sps:$4 sm:$0xff] (!%p217_p2)   ;;  %v779_v27 = vld [vmem:[%s970_s3 + $0x78] ss:$12 sps:$4 sm:$0xff] (!%p217_p2)   ;;  %v781_v29 = vld [vmem:[%s970_s3 + $0x94] ss:$12 sps:$4 sm:$0xff] (!%p217_p2)  }
   0xc   : > { %729 = vmatprep.subr.bf16.mxu1 (!%p217_p2), %v801_v4  ;;  %499 = vmatprep.subr.bf16.mxu0 (!%p217_p2), %v765_v17  ;;  %v802_v30 = vmov (!%p217_p2), 0   ;;  %vm803_vm0 = vmmov (!%p217_p2), 0   ;;  %v783_v31 = vld [vmem:[%s970_s3 + $0x90] ss:$12 sps:$4 sm:$0xff] (!%p217_p2)   ;;  %v784_v32 = vld [vmem:[%s970_s3 + $0x98] ss:$12 sps:$4 sm:$0xff] (!%p217_p2)  }
   0xd   : > { %s975_s23 = smov (!%p253_p3, %s682_s23), 3  ;;  %527 = vmatprep.mubr.bf16.mxu0 %v802_v30  ;;  %741 = vmatprep.mubr.msk.bf16.mxu1 %vm803_vm0, %v801_v4  ;;  %v785_v33 = vld [vmem:[%s970_s3 + $0xac] ss:$12 sps:$4 sm:$0xff]   ;;  %v787_v34 = vld [vmem:[%s970_s3 + $0xa8] ss:$12 sps:$4 sm:$0xff]   ;;  %v353_v54 = vshrl.u32 %v352_v53, 7 }
   0xe   : > { %s683_s24 = sshll.u32 %s975_s23, 3  ;;  %v788_v35 = vld [vmem:[%s970_s3 + $0xb0] ss:$12 sps:$4 sm:$0xff]   ;;  %v688_v43 = vld [vmem:[%s968_s1] ss:$0 sm:$0xff] }
   0xf   : > { %s256_s27 = scalar_lea.vmem %s967_s0, %s683_s24  ;;  %500 = vmatpush1.bf16.msra.mxu0 %v767_v18  ;;  %730 = vmatpush3.bf16.msra.mxu1 %v768_v19  ;;  %v689_v45 = vld [vmem:[%s969_s2] ss:$0 sm:$0xff]  ;;  %s262_s16 = scalar_lea.vmem %s972_s5, %s683_s24  ;;  %v354_v55 = vsub.s32 0, %v353_v54  ;;  %v362_v56 = vsub.s32 2, %v353_v54  ;;  %v358_v58 = vsub.s32 1, %v353_v54 }
  0x10   : > { %v272_v0 = vld [vmem:[%s256_s27] sm:$0xff]  ;;  %v273_v1 = vld [vmem:[%s256_s27 + $0x8] sm:$0xff]  ;;  %731 = vmatprep.subr.bf16.mxu1 %v801_v4  ;;  %501 = vmatprep.subr.bf16.mxu0 %v769_v20  ;;  %s745_s24 = smul.u32 24, %s975_s23 }
  0x11   : > { %276 = vadd.xlane.f32.xlu0 %v272_v0  ;;  %v350_v57 = vld [vmem:[%s971_s4] sm:$0x7] }
  0x12   : > { %v355_v59 = vrot.slane %v350_v57, %v354_v55  ;;  %v363_v60 = vrot.slane %v350_v57, %v362_v56  ;;  %v359_v61 = vrot.slane %v350_v57, %v358_v58  ;;  %s269_s22 = scalar_lea.vmem %s973_s6, %s745_s24 }
  0x13   : > { %502 = vmatpush1.bf16.msra.mxu0 %v771_v21  ;;  %732 = vmatpush3.bf16.msra.mxu1 %v772_v22 }
  0x14   : > { %733 = vmatprep.subr.bf16.mxu1 %v801_v4  ;;  %503 = vmatprep.subr.bf16.mxu0 %v773_v23 }
  0x15   : > { %278 = vadd.xlane.f32.xlu0 %v273_v1 }
  0x17   : > { %504 = vmatpush1.bf16.msra.mxu0 %v775_v24  ;;  %734 = vmatpush3.bf16.msra.mxu1 %v776_v25 }
  0x18   : > { %505 = vmatprep.subr.bf16.mxu0 %v777_v26  ;;  %735 = vmatprep.subr.bf16.mxu1 %v801_v4 }
  0x1b   : > { %506 = vmatpush1.bf16.msra.mxu0 %v779_v27  ;;  %736 = vmatpush3.bf16.msra.mxu1 %v780_v28 }
  0x1c   : > { %507 = vmatprep.subr.bf16.mxu0 %v781_v29  ;;  %737 = vmatprep.subr.bf16.mxu1 %v801_v4 }
  0x1f   : > { %508 = vmatpush1.bf16.msra.mxu0 %v783_v31  ;;  %738 = vmatpush3.bf16.msra.mxu1 %v784_v32 }
  0x20   : > { %509 = vmatprep.subr.bf16.mxu0 %v785_v33  ;;  %739 = vmatprep.subr.bf16.mxu1 %v801_v4 }
  0x23   : > { %510 = vmatpush1.bf16.msra.mxu0 %v787_v34  ;;  %740 = vmatpush3.bf16.msra.mxu1 %v788_v35 }
  0x9e   : > { %v277_v7 = vpop.xlane.xlu0 %276 }
  0x9f   : > { %v281_v8 = vmul.f32 0.0078125, %v277_v7 }
  0xa1   : > { %v869_v9 = vsub.f32 %v272_v0, %v281_v8 }
  0xa2   : > { %v279_v10 = vpop.xlane.xlu0 %278 }
  0xa3   : > { %v282_v11 = vmul.f32 0.0078125, %v279_v10  ;;  %v285_v12 = vmul.f32 %v869_v9, %v869_v9 }
  0xa5   : > { %v873_v13 = vsub.f32 %v273_v1, %v282_v11  ;;  %287 = vadd.xlane.f32.xlu1 %v285_v12 }
  0xa7   : > { %v286_v14 = vmul.f32 %v873_v13, %v873_v13 }
  0xa9   : > { %289 = vadd.xlane.f32.xlu1 %v286_v14 }
 0x132   : > { %v288_v36 = vpop.xlane.xlu1 %287 }
 0x133   : > { %v291_v37 = vmul.f32 0.0078125, %v288_v36 }
 0x135   : > { %v293_v38 = vadd.f32 1e-05, %v291_v37 }
 0x136   : > { %v290_v39 = vpop.xlane.xlu1 %289 }
 0x137   : > { %789 = vrsqrt.f32 %v293_v38  ;;  %v292_v40 = vmul.f32 0.0078125, %v290_v39 }
 0x139   : > { %v294_v41 = vadd.f32 1e-05, %v292_v40 }
 0x13b   : > { %791 = vrsqrt.f32 %v294_v41 }
 0x141   : > { %v790_v42 = vpop.eup %789 }
 0x142   : > { %v297_v44 = vmul.f32 %v790_v42, %v869_v9 }
 0x144   : > { %v305_v46 = vmul.f32 %v688_v43, %v297_v44 }
 0x145   : > { %v792_v47 = vpop.eup %791 }
 0x146   : > { %v298_v48 = vmul.f32 %v792_v47, %v873_v13  ;;  %v313_v49 = vadd.f32 %v689_v45, %v305_v46 }
 0x148   : > { %v306_v50 = vmul.f32 %v688_v43, %v298_v48  ;;  %315 = vst [vmem:[%s262_s16] sm:$0xff] %v313_v49 }
 0x14a   : > { %v314_v51 = vadd.f32 %v689_v45, %v306_v50 }
 0x14c   : > { %316 = vst [vmem:[%s262_s16 + $0x8] sm:$0xff] %v314_v51  ;;  %v317_v52 = vpack.c.bf16 %v314_v51, %v313_v49 }
 0x14e   : > { %528 = vmatmul.mubr.bf16.vlgmr.msra.gmra.mrb[0].mxu0 %v317_v52  ;;  %742 = vmatmul.mubr.bf16.vlgmr.msra.gmra.mrb[0].mxu1 %v317_v52 }
 0x221   : > { %v529_v62 = vpop.f32.mrb[0].mxu0  ;;  %v572_v63 = vpop.f32.mrb[0].mxu1 }
 0x222   : > { %v530_v0 = vadd.f32 %v529_v62, %v355_v59  ;;  %v573_v1 = vadd.f32 %v572_v63, %v363_v60  ;;  %v531_v2 = vpop.f32.mrb[1].mxu0  ;;  %v743_v3 = vpop.f32.mrb[1].mxu1 }
 0x223   : > { %v532_v4 = vadd.f32 %v531_v2, %v359_v61  ;;  %v533_v5 = vpop.f32.mrb[2].mxu0  ;;  %v575_v6 = vpop.f32.mrb[2].mxu1 }
 0x224   : > { %579 = vst [vmem:[%s269_s22] sm:$0xff] %v530_v0  ;;  %581 = vst [vmem:[%s269_s22 + $0x10] sm:$0xff] %v573_v1  ;;  %v534_v7 = vadd.f32 %v533_v5, %v355_v59  ;;  %v576_v8 = vadd.f32 %v575_v6, %v363_v60  ;;  %v535_v9 = vpop.f32.mrb[3].mxu0  ;;  %v744_v10 = vpop.f32.mrb[3].mxu1 }
 0x225   : > { %580 = vst [vmem:[%s269_s22 + $0x8] sm:$0xff] %v532_v4  ;;  %v536_v11 = vadd.f32 %v535_v9, %v359_v61 }
 0x226   : > { %582 = vst [vmem:[%s269_s22 + $0x18] sm:$0xff] %v534_v7  ;;  %584 = vst [vmem:[%s269_s22 + $0x28] sm:$0xff] %v576_v8 }
 0x227   : > { %583 = vst [vmem:[%s269_s22 + $0x20] sm:$0xff] %v536_v11 }
 0x228 PF: > { %s17_s21 = sadd.s32 1, %s799_s21  }
 0x229   : > { %p14_p4 = scmp.ge.s32.totalorder %s17_s21, 4  }
 0x22b   :  { %16 = sbr.rel (!%p14_p4) target bundleno = 1 (0x1), region = 82 }

// kernel: _block_forward_jit.4
= control target key start
LH: loop header
LB: loop body
LE: loop exit
PB: predicated region body
PF: predicated region fallthrough
CT: control target
= control target key end

     0   :  { %s628_s21 = smov 0   ;;  %s686_s0 = inlined_call_operand.vmem [shape: f32[32,128], index: 0, kind: input, shape index: {}]   ;;  %s687_s1 = inlined_call_operand.vmem [shape: f32[32,128], index: 1, kind: input, shape index: {}]   ;;  %s688_s2 = inlined_call_operand.vmem [shape: bf16[128,128], index: 2, kind: input, shape index: {}]   ;;  %s689_s3 = inlined_call_operand.vmem [shape: f32[1,128], index: 3, kind: input, shape index: {}]   ;;  %s690_s4 = inlined_call_operand.vmem [shape: f32[1,128], index: 4, kind: input, shape index: {}]   ;;  %s691_s5 = inlined_call_operand.vmem [shape: f32[1,128], index: 5, kind: input, shape index: {}]   ;;  %s692_s6 = inlined_call_operand.vmem [shape: f32[32,128], index: 6, kind: output, shape index: {}]  }
   0x1 LB: > { %s508_s22 = sadd.s32 4294967295, %s589_s21   ;;  %p512_p0 = scmp.ge.s32.totalorder %s589_s21, 1  ;;  %s589_s21 = sphi %s628_s21, %s16_s21  }
   0x2   : > { %p224_p1 = scmp.lt.s32.totalorder %s589_s21, 3 }
   0x4   : > { %p225_p2 = pnand %p512_p0, %p224_p1 }
   0x5   : > { %v571_v0 = vld [vmem:[%s688_s2] sm:$0xff] (!%p225_p2)   ;;  %v591_v1 = vmov (!%p225_p2), 0.0   ;;  %v572_v2 = vld [vmem:[%s688_s2 + $0x8] sm:$0xff] (!%p225_p2)   ;;  %vm592_vm0 = vmmov (!%p225_p2), 0   ;;  %v573_v3 = vld [vmem:[%s688_s2 + $0x10] sm:$0xff] (!%p225_p2)   ;;  %s513_s29 = sshll.u32 (!%p225_p2), %s508_s22, 1 }
   0x6   : > { %228 = sbr.rel (%p225_p2) target bundleno = 570 (0x23a), region = 44  ;;  %541 = vmatprep.subr.bf16.mxu0 (!%p225_p2), %v591_v1  ;;  %557 = vmatprep.mubr.msk.bf16.mxu0 (!%p225_p2), %vm592_vm0, %v591_v1  ;;  %v574_v4 = vld [vmem:[%s688_s2 + $0x18] sm:$0xff] (!%p225_p2)   ;;  %p260_p3 = scmp.lt.s32.totalorder (!%p225_p2), %s513_s29, 3  ;;  %v575_v5 = vld [vmem:[%s688_s2 + $0x20] sm:$0xff] (!%p225_p2)   ;;  %v576_v6 = vld [vmem:[%s688_s2 + $0x28] sm:$0xff] (!%p225_p2)  }
   0x7   : > { %542 = vmatpush3.bf16.msra.mxu0 (!%p225_p2), %v571_v0  ;;  %v577_v7 = vld [vmem:[%s688_s2 + $0x30] sm:$0xff] (!%p225_p2)   ;;  %v578_v8 = vld [vmem:[%s688_s2 + $0x38] sm:$0xff] (!%p225_p2)   ;;  %v519_v12 = vld [vmem:[%s689_s3] ss:$0 sm:$0xff] (!%p225_p2) }
   0x8   : > { %543 = vmatprep.subr.bf16.mxu0 (!%p225_p2), %v591_v1  ;;  %v528_v38 = vld [vmem:[%s690_s4] ss:$0 sm:$0xff] (!%p225_p2) }
   0x9   : > { %v529_v40 = vld [vmem:[%s691_s5] ss:$0 sm:$0xff] (!%p225_p2) }
   0xb   : > { %544 = vmatpush3.bf16.msra.mxu0 (!%p225_p2), %v572_v2 }
   0xc   : > { %545 = vmatprep.subr.bf16.mxu0 (!%p225_p2), %v591_v1 }
   0xd   : > { %s694_s29 = smov (!%p260_p3, %s513_s29), 3 }
   0xe   : > { %s654_s12 = sshll.u32 %s694_s29, 3 }
   0xf   : > { %546 = vmatpush3.bf16.msra.mxu0 %v573_v3  ;;  %s263_s17 = scalar_lea.vmem %s686_s0, %s654_s12  ;;  %s269_s23 = scalar_lea.vmem %s687_s1, %s654_s12 }
  0x10   : > { %547 = vmatprep.subr.bf16.mxu0 %v591_v1  ;;  %v278_v9 = vld [vmem:[%s263_s17] sm:$0xff]  ;;  %v279_v10 = vld [vmem:[%s263_s17 + $0x8] sm:$0xff]  ;;  %s275_s8 = scalar_lea.vmem %s692_s6, %s654_s12 }
  0x11   : > { %v280_v11 = vpack.c.bf16 %v279_v10, %v278_v9  ;;  %v393_v14 = vld [vmem:[%s269_s23] sm:$0xff]  ;;  %v394_v21 = vld [vmem:[%s269_s23 + $0x8] sm:$0xff] }
  0x13   : > { %548 = vmatpush3.bf16.msra.mxu0 %v574_v4 }
  0x14   : > { %549 = vmatprep.subr.bf16.mxu0 %v591_v1 }
  0x17   : > { %550 = vmatpush3.bf16.msra.mxu0 %v575_v5 }
  0x18   : > { %551 = vmatprep.subr.bf16.mxu0 %v591_v1 }
  0x1b   : > { %552 = vmatpush3.bf16.msra.mxu0 %v576_v6 }
  0x1c   : > { %553 = vmatprep.subr.bf16.mxu0 %v591_v1 }
  0x1f   : > { %554 = vmatpush3.bf16.msra.mxu0 %v577_v7 }
  0x20   : > { %555 = vmatprep.subr.bf16.mxu0 %v591_v1 }
  0x23   : > { %556 = vmatpush3.bf16.msra.mxu0 %v578_v8 }
  0x26   : > { %558 = vmatmul.mubr.bf16.vlgmr.msra.gmra.mrb[0].mxu0 %v280_v11 }
  0xf9   : > { %v386_v13 = vpop.f32.mrb[0].mxu0 }
  0xfa   : > { %v387_v15 = vadd.f32 %v519_v12, %v386_v13  ;;  %v559_v16 = vpop.f32.mrb[1].mxu0 }
  0xfb   : > { %v389_v17 = vpop.f32.mrb[2].mxu0 }
  0xfc   : > { %v390_v18 = vadd.f32 %v519_v12, %v389_v17  ;;  %v560_v19 = vpop.f32.mrb[3].mxu0  ;;  %v395_v20 = vadd.f32 %v393_v14, %v387_v15 }
  0xfe   : > { %399 = vadd.xlane.f32.xlu0 %v395_v20  ;;  %v396_v22 = vadd.f32 %v394_v21, %v390_v18 }
 0x102   : > { %401 = vadd.xlane.f32.xlu0 %v396_v22 }
 0x18b   : > { %v400_v23 = vpop.xlane.xlu0 %399 }
 0x18c   : > { %v404_v24 = vmul.f32 0.0078125, %v400_v23 }
 0x18e   : > { %v406_v25 = vsub.f32 %v395_v20, %v404_v24 }
 0x18f   : > { %v402_v26 = vpop.xlane.xlu0 %401 }
 0x190   : > { %v405_v27 = vmul.f32 0.0078125, %v402_v26  ;;  %v408_v28 = vmul.f32 %v406_v25, %v406_v25 }
 0x192   : > { %v407_v29 = vsub.f32 %v396_v22, %v405_v27  ;;  %410 = vadd.xlane.f32.xlu1 %v408_v28 }
 0x194   : > { %v409_v30 = vmul.f32 %v407_v29, %v407_v29 }
 0x196   : > { %412 = vadd.xlane.f32.xlu1 %v409_v30 }
 0x21f   : > { %v411_v31 = vpop.xlane.xlu1 %410 }
 0x220   : > { %v414_v32 = vmul.f32 0.0078125, %v411_v31 }
 0x222   : > { %v416_v33 = vadd.f32 1e-05, %v414_v32 }
 0x223   : > { %v413_v34 = vpop.xlane.xlu1 %412 }
 0x224   : > { %579 = vrsqrt.f32 %v416_v33  ;;  %v415_v35 = vmul.f32 0.0078125, %v413_v34 }
 0x226   : > { %v417_v36 = vadd.f32 1e-05, %v415_v35 }
 0x228   : > { %581 = vrsqrt.f32 %v417_v36 }
 0x22e   : > { %v580_v37 = vpop.eup %579 }
 0x22f   : > { %v420_v39 = vmul.f32 %v580_v37, %v406_v25 }
 0x231   : > { %v428_v41 = vmul.f32 %v528_v38, %v420_v39 }
 0x232   : > { %v582_v42 = vpop.eup %581 }
 0x233   : > { %v436_v43 = vadd.f32 %v529_v40, %v428_v41  ;;  %v421_v44 = vmul.f32 %v582_v42, %v407_v29 }
 0x235   : > { %438 = vst [vmem:[%s275_s8] sm:$0xff] %v436_v43  ;;  %v429_v45 = vmul.f32 %v528_v38, %v421_v44 }
 0x237   : > { %v437_v46 = vadd.f32 %v529_v40, %v429_v45 }
 0x239   : > { %439 = vst [vmem:[%s275_s8 + $0x8] sm:$0xff] %v437_v46 }
 0x23a PF: > { %s16_s21 = sadd.s32 1, %s589_s21  }
 0x23b   : > { %p13_p4 = scmp.ge.s32.totalorder %s16_s21, 4  }
 0x23d   :  { %15 = sbr.rel (!%p13_p4) target bundleno = 1 (0x1), region = 77 }

// kernel: _block_forward_jit.5
= control target key start
LH: loop header
LB: loop body
LE: loop exit
PB: predicated region body
PF: predicated region fallthrough
CT: control target
= control target key end

     0   :  { %s1537_s30 = smov 0   ;;  %s1841_s0 = inlined_call_operand.vmem [shape: f32[32,128], index: 0, kind: input, shape index: {}]   ;;  %s1842_s1 = inlined_call_operand.vmem [shape: bf16[128,512], index: 1, kind: input, shape index: {}]   ;;  %s1843_s2 = inlined_call_operand.vmem [shape: f32[1,512], index: 2, kind: input, shape index: {}]   ;;  %s1844_s3 = inlined_call_operand.vmem [shape: f32[1,512], index: 3, kind: input, shape index: {}]   ;;  %s1845_s4 = inlined_call_operand.vmem [shape: f32[1,512], index: 4, kind: input, shape index: {}]   ;;  %s1846_s5 = inlined_call_operand.vmem [shape: bf16[512,128], index: 5, kind: input, shape index: {}]   ;;  %s1847_s6 = inlined_call_operand.vmem [shape: f32[1,128], index: 6, kind: input, shape index: {}]   ;;  %s1848_s7 = inlined_call_operand.vmem [shape: f32[1,128], index: 7, kind: input, shape index: {}]   ;;  %s1849_s8 = inlined_call_operand.vmem [shape: f32[1,128], index: 8, kind: input, shape index: {}]   ;;  %s1850_s9 = inlined_call_operand.vmem [shape: f32[32,128], index: 9, kind: output, shape index: {}]  }
   0x1 LB: > { %s1243_s10 = sadd.s32 4294967295, %s1484_s30   ;;  %p1247_p0 = scmp.ge.s32.totalorder %s1484_s30, 1  ;;  %s1484_s30 = sphi %s1537_s30, %s19_s30  }
   0x2   : > { %p288_p1 = scmp.lt.s32.totalorder %s1484_s30, 3 }
   0x4   : > { %p289_p2 = pnand %p1247_p0, %p288_p1 }
   0x5   : > { %v1374_v0 = vld [vmem:[%s1842_s1 + $0x4] ss:$16 sps:$4 sm:$0xff] (!%p289_p2)   ;;  %v1376_v1 = vld [vmem:[%s1842_s1 + $0xc] ss:$16 sps:$4 sm:$0xff] (!%p289_p2)   ;;  %v1486_v2 = vmov (!%p289_p2), 0   ;;  %s1248_s20 = sshll.u32 (!%p289_p2), %s1243_s10, 1  ;;  %v374_v36 = vlaneseq (!%p289_p2) }
   0x6   : > { %292 = sbr.rel (%p289_p2) target bundleno = 1137 (0x471), region = 56  ;;  %586 = vmatprep.mubr.bf16.mxu0 (!%p289_p2), %v1486_v2  ;;  %629 = vmatprep.mubr.bf16.mxu1 (!%p289_p2), %v1486_v2  ;;  %v1378_v3 = vld [vmem:[%s1842_s1] ss:$16 sps:$4 sm:$0xff] (!%p289_p2)   ;;  %v1379_v4 = vld [vmem:[%s1842_s1 + $0x8] ss:$16 sps:$4 sm:$0xff] (!%p289_p2)   ;;  %p325_p3 = scmp.lt.s32.totalorder (!%p289_p2), %s1248_s20, 3 }
   0x7   : > { %554 = vmatprep.subr.bf16.mxu0 (!%p289_p2), %v1374_v0  ;;  %597 = vmatprep.subr.bf16.mxu1 (!%p289_p2), %v1376_v1  ;;  %v1380_v5 = vld [vmem:[%s1842_s1 + $0x24] ss:$16 sps:$4 sm:$0xff] (!%p289_p2)   ;;  %v1382_v6 = vld [vmem:[%s1842_s1 + $0x2c] ss:$16 sps:$4 sm:$0xff] (!%p289_p2)   ;;  %v1384_v7 = vld [vmem:[%s1842_s1 + $0x20] ss:$16 sps:$4 sm:$0xff] (!%p289_p2)  }
   0x8   : > { %555 = vmatpush1.bf16.msra.mxu0 (!%p289_p2), %v1378_v3  ;;  %598 = vmatpush1.bf16.msra.mxu1 (!%p289_p2), %v1379_v4  ;;  %v1385_v8 = vld [vmem:[%s1842_s1 + $0x28] ss:$16 sps:$4 sm:$0xff] (!%p289_p2)   ;;  %v1386_v9 = vld [vmem:[%s1842_s1 + $0x44] ss:$16 sps:$4 sm:$0xff] (!%p289_p2)   ;;  %v1388_v10 = vld [vmem:[%s1842_s1 + $0x4c] ss:$16 sps:$4 sm:$0xff] (!%p289_p2)  }
   0x9   : > { %556 = vmatprep.subr.bf16.mxu0 (!%p289_p2), %v1380_v5  ;;  %599 = vmatprep.subr.bf16.mxu1 (!%p289_p2), %v1382_v6  ;;  %v1390_v11 = vld [vmem:[%s1842_s1 + $0x40] ss:$16 sps:$4 sm:$0xff] (!%p289_p2)   ;;  %v1391_v12 = vld [vmem:[%s1842_s1 + $0x48] ss:$16 sps:$4 sm:$0xff] (!%p289_p2)   ;;  %v1392_v13 = vld [vmem:[%s1842_s1 + $0x64] ss:$16 sps:$4 sm:$0xff] (!%p289_p2)  }
   0xa   : > { %v1394_v14 = vld [vmem:[%s1842_s1 + $0x6c] ss:$16 sps:$4 sm:$0xff] (!%p289_p2)   ;;  %v1396_v15 = vld [vmem:[%s1842_s1 + $0x60] ss:$16 sps:$4 sm:$0xff] (!%p289_p2)   ;;  %v1397_v16 = vld [vmem:[%s1842_s1 + $0x68] ss:$16 sps:$4 sm:$0xff] (!%p289_p2)  }
   0xb   : > { %v1398_v17 = vld [vmem:[%s1842_s1 + $0x84] ss:$16 sps:$4 sm:$0xff] (!%p289_p2)   ;;  %v1400_v18 = vld [vmem:[%s1842_s1 + $0x8c] ss:$16 sps:$4 sm:$0xff] (!%p289_p2)   ;;  %v1402_v19 = vld [vmem:[%s1842_s1 + $0x80] ss:$16 sps:$4 sm:$0xff] (!%p289_p2)  }
   0xc   : > { %557 = vmatpush1.bf16.msra.mxu0 (!%p289_p2), %v1384_v7  ;;  %600 = vmatpush1.bf16.msra.mxu1 (!%p289_p2), %v1385_v8  ;;  %v1403_v20 = vld [vmem:[%s1842_s1 + $0x88] ss:$16 sps:$4 sm:$0xff] (!%p289_p2)   ;;  %v1404_v21 = vld [vmem:[%s1842_s1 + $0xa4] ss:$16 sps:$4 sm:$0xff] (!%p289_p2)   ;;  %v1406_v22 = vld [vmem:[%s1842_s1 + $0xac] ss:$16 sps:$4 sm:$0xff] (!%p289_p2)  }
   0xd   : > { %558 = vmatprep.subr.bf16.mxu0 %v1386_v9  ;;  %601 = vmatprep.subr.bf16.mxu1 %v1388_v10  ;;  %s1852_s20 = smov (!%p325_p3, %s1248_s20), 3  ;;  %v1408_v23 = vld [vmem:[%s1842_s1 + $0xa0] ss:$16 sps:$4 sm:$0xff]   ;;  %v1409_v24 = vld [vmem:[%s1842_s1 + $0xa8] ss:$16 sps:$4 sm:$0xff]   ;;  %v375_v37 = vshrl.u32 %v374_v36, 7 }
   0xe   : > { %s1249_s22 = sshll.u32 %s1852_s20, 3  ;;  %v1410_v25 = vld [vmem:[%s1842_s1 + $0xc4] ss:$16 sps:$4 sm:$0xff]   ;;  %v1412_v26 = vld [vmem:[%s1842_s1 + $0xcc] ss:$16 sps:$4 sm:$0xff]  }
   0xf   : > { %v1414_v27 = vld [vmem:[%s1842_s1 + $0xc0] ss:$16 sps:$4 sm:$0xff]   ;;  %v1415_v28 = vld [vmem:[%s1842_s1 + $0xc8] ss:$16 sps:$4 sm:$0xff]   ;;  %v1416_v29 = vld [vmem:[%s1842_s1 + $0xe4] ss:$16 sps:$4 sm:$0xff]   ;;  %s328_s17 = scalar_lea.vmem %s1841_s0, %s1249_s22  ;;  %s334_s29 = scalar_lea.vmem %s1850_s9, %s1249_s22 }
  0x10   : > { %559 = vmatpush1.bf16.msra.mxu0 %v1390_v11  ;;  %602 = vmatpush1.bf16.msra.mxu1 %v1391_v12  ;;  %v1418_v30 = vld [vmem:[%s1842_s1 + $0xec] ss:$16 sps:$4 sm:$0xff]   ;;  %v1420_v31 = vld [vmem:[%s1842_s1 + $0xe0] ss:$16 sps:$4 sm:$0xff]   ;;  %v1421_v32 = vld [vmem:[%s1842_s1 + $0xe8] ss:$16 sps:$4 sm:$0xff]  }
  0x11   : > { %560 = vmatprep.subr.bf16.mxu0 %v1392_v13  ;;  %603 = vmatprep.subr.bf16.mxu1 %v1394_v14  ;;  %v1651_v33 = vld [vmem:[%s328_s17] sm:$0xff]  ;;  %v1653_v34 = vld [vmem:[%s328_s17 + $0x8] sm:$0xff]  ;;  %v1657_v38 = vsub.s32 0, %v375_v37  ;;  %v1662_v40 = vsub.s32 2, %v375_v37  ;;  %v1664_v41 = vsub.s32 1, %v375_v37  ;;  %v1669_v45 = vsub.s32 3, %v375_v37 }
  0x12   : > { %v339_v35 = vpack.c.bf16 %v1653_v34, %v1651_v33  ;;  %v372_v39 = vld [vmem:[%s1843_s2] sm:$0xf]  ;;  %v1426_v37 = vld [vmem:[%s1846_s5 + $0x48] sm:$0xff]  }
  0x13   : > { %v377_v42 = vrot.slane %v372_v39, %v1657_v38  ;;  %v385_v43 = vrot.slane %v372_v39, %v1662_v40  ;;  %v381_v44 = vrot.slane %v372_v39, %v1664_v41  ;;  %v389_v53 = vrot.slane %v372_v39, %v1669_v45  ;;  %v1425_v36 = vld [vmem:[%s1846_s5 + $0x80] sm:$0xff]   ;;  %v1427_v39 = vld [vmem:[%s1846_s5 + $0xc8] sm:$0xff]  }
  0x14   : > { %561 = vmatpush1.bf16.msra.mxu0 %v1396_v15  ;;  %604 = vmatpush1.bf16.msra.mxu1 %v1397_v16 }
  0x15   : > { %562 = vmatprep.subr.bf16.mxu0 %v1398_v17  ;;  %605 = vmatprep.subr.bf16.mxu1 %v1400_v18 }
  0x18   : > { %563 = vmatpush1.bf16.msra.mxu0 %v1402_v19  ;;  %606 = vmatpush1.bf16.msra.mxu1 %v1403_v20 }
  0x19   : > { %564 = vmatprep.subr.bf16.mxu0 %v1404_v21  ;;  %607 = vmatprep.subr.bf16.mxu1 %v1406_v22 }
  0x1c   : > { %565 = vmatpush1.bf16.msra.mxu0 %v1408_v23  ;;  %608 = vmatpush1.bf16.msra.mxu1 %v1409_v24 }
  0x1d   : > { %566 = vmatprep.subr.bf16.mxu0 %v1410_v25  ;;  %609 = vmatprep.subr.bf16.mxu1 %v1412_v26 }
  0x20   : > { %567 = vmatpush1.bf16.msra.mxu0 %v1414_v27  ;;  %610 = vmatpush1.bf16.msra.mxu1 %v1415_v28 }
  0x21   : > { %568 = vmatprep.subr.bf16.mxu0 %v1416_v29  ;;  %611 = vmatprep.subr.bf16.mxu1 %v1418_v30 }
  0x24   : > { %569 = vmatpush1.bf16.msra.mxu0 %v1420_v31  ;;  %612 = vmatpush1.bf16.msra.mxu1 %v1421_v32  ;;  %v1422_v31 = vld [vmem:[%s1846_s5 + $0x40] sm:$0xff]  }
  0x25   : > { %v1423_v32 = vld [vmem:[%s1846_s5 + $0xc0] sm:$0xff]   ;;  %1321 = vmatprep.subr.bf16.mxu0 %v1422_v31 }
  0x26   : > { %1343 = vmatprep.subr.bf16.mxu1 %v1423_v32 }
  0x27   : > { %587 = vmatmul.mubr.bf16.vlgmr.msra.gmra.mrb[0].mxu0 %v339_v35  ;;  %630 = vmatmul.mubr.bf16.vlgmr.msra.gmra.mrb[0].mxu1 %v339_v35  ;;  %v1424_v35 = vld [vmem:[%s1846_s5] sm:$0xff]  }
  0x28   : > { %1322 = vmatpush3.bf16.msra.mxu0 %v1424_v35  ;;  %1344 = vmatpush3.bf16.msra.mxu1 %v1425_v36 }
  0x29   : > { %1323 = vmatprep.subr.bf16.mxu0 %v1426_v37  ;;  %1345 = vmatprep.subr.bf16.mxu1 %v1427_v39 }
  0xfa   : > { %v588_v46 = vpop.f32.mrb[0].mxu0  ;;  %v631_v47 = vpop.f32.mrb[0].mxu1 }
  0xfb   : > { %v589_v48 = vadd.f32 %v588_v46, %v377_v42  ;;  %v590_v49 = vpop.f32.mrb[1].mxu0  ;;  %v633_v50 = vpop.f32.mrb[1].mxu1  ;;  %v632_v51 = vadd.f32 %v631_v47, %v385_v43  ;;  %v1431_v46 = vld [vmem:[%s1846_s5 + $0xd0] sm:$0xff]  }
  0xfc   : > { %v591_v52 = vadd.f32 %v590_v49, %v381_v44  ;;  %v592_v54 = vpop.f32.mrb[2].mxu0  ;;  %v635_v55 = vpop.f32.mrb[2].mxu1  ;;  %v634_v61 = vadd.f32 %v633_v50, %v389_v53  ;;  %v1432_v47 = vld [vmem:[%s1846_s5 + $0x10] sm:$0xff]   ;;  %v1434_v49 = vld [vmem:[%s1846_s5 + $0x58] sm:$0xff]  }
  0xfd   : > { %v593_v56 = vadd.f32 %v592_v54, %v377_v42  ;;  %v594_v57 = vpop.f32.mrb[3].mxu0  ;;  %v637_v58 = vpop.f32.mrb[3].mxu1  ;;  %v636_v62 = vadd.f32 %v635_v55, %v385_v43  ;;  %v1428_v42 = vld [vmem:[%s1846_s5 + $0x8] sm:$0xff]   ;;  %v1435_v50 = vld [vmem:[%s1846_s5 + $0xd8] sm:$0xff]   ;;  %v1439_v54 = vld [vmem:[%s1846_s5 + $0xe0] sm:$0xff]  }
  0xfe   : > { %v642_v59 = vadd.f32 %v591_v52, %v589_v48  ;;  %v595_v60 = vadd.f32 %v594_v57, %v381_v44  ;;  %v638_v3 = vadd.f32 %v637_v58, %v389_v53  ;;  %v1429_v43 = vld [vmem:[%s1846_s5 + $0x88] sm:$0xff]   ;;  %v1430_v44 = vld [vmem:[%s1846_s5 + $0x50] sm:$0xff]   ;;  %1324 = vmatpush3.bf16.msra.mxu0 %v1428_v42  ;;  %v1438_v53 = vld [vmem:[%s1846_s5 + $0x60] sm:$0xff]  }
  0xff   : > { %1346 = vmatpush3.bf16.msra.mxu1 %v1429_v43  ;;  %1325 = vmatprep.subr.bf16.mxu0 %v1430_v44  ;;  %v1440_v55 = vld [vmem:[%s1846_s5 + $0x20] sm:$0xff]   ;;  %v1442_v57 = vld [vmem:[%s1846_s5 + $0x68] sm:$0xff]  }
 0x100   : > { %v647_v63 = vadd.f32 %v595_v60, %v593_v56  ;;  %v643_v0 = vadd.f32 %v642_v59, %v632_v51  ;;  %1347 = vmatprep.subr.bf16.mxu1 %v1431_v46  ;;  %v1443_v58 = vld [vmem:[%s1846_s5 + $0xe8] sm:$0xff]  }
 0x101   : > { %v1444_v59 = vld [vmem:[%s1846_s5 + $0x28] sm:$0xff]  }
 0x102   : > { %v644_v1 = vadd.f32 %v643_v0, %v634_v61  ;;  %v648_v2 = vadd.f32 %v647_v63, %v636_v62  ;;  %1326 = vmatpush3.bf16.msra.mxu0 %v1432_v47  ;;  %v1448_v63 = vld [vmem:[%s1846_s5 + $0x30] sm:$0xff]  }
 0x103   : > { %1327 = vmatprep.subr.bf16.mxu0 %v1434_v49  ;;  %v1449_v0 = vld [vmem:[%s1846_s5 + $0xb0] sm:$0xff]  }
 0x104   : > { %645 = vadd.xlane.f32.xlu0 %v644_v1  ;;  %v649_v4 = vadd.f32 %v648_v2, %v638_v3  ;;  %v1450_v1 = vld [vmem:[%s1846_s5 + $0x78] sm:$0xff]  }
 0x105   : > { %v1451_v2 = vld [vmem:[%s1846_s5 + $0xf8] sm:$0xff]  }
 0x108   : > { %650 = vadd.xlane.f32.xlu0 %v649_v4  ;;  %v1453_v4 = vld [vmem:[%s1846_s5 + $0xb8] sm:$0xff]  }
 0x191   : > { %v646_v5 = vpop.xlane.xlu0 %645 }
 0x192   : > { %v653_v6 = vmul.f32 0.001953125, %v646_v5 }
 0x194   : > { %v1672_v7 = vsub.f32 %v589_v48, %v653_v6  ;;  %v1674_v8 = vsub.f32 %v591_v52, %v653_v6  ;;  %v1676_v9 = vsub.f32 %v632_v51, %v653_v6  ;;  %v1678_v11 = vsub.f32 %v634_v61, %v653_v6  ;;  %v1433_v48 = vld [vmem:[%s1846_s5 + $0x90] sm:$0xff]   ;;  %v1436_v51 = vld [vmem:[%s1846_s5 + $0x18] sm:$0xff]  }
 0x195   : > { %v651_v10 = vpop.xlane.xlu0 %650  ;;  %1348 = vmatpush3.bf16.msra.mxu1 %v1433_v48  ;;  %v1437_v52 = vld [vmem:[%s1846_s5 + $0x98] sm:$0xff]   ;;  %1328 = vmatpush3.bf16.msra.mxu0 %v1436_v51  ;;  %v1446_v61 = vld [vmem:[%s1846_s5 + $0x70] sm:$0xff]  }
 0x196   : > { %v654_v12 = vmul.f32 0.001953125, %v651_v10  ;;  %v663_v13 = vmul.f32 %v1672_v7, %v1672_v7  ;;  %v664_v14 = vmul.f32 %v1674_v8, %v1674_v8  ;;  %v665_v15 = vmul.f32 %v1676_v9, %v1676_v9  ;;  %1349 = vmatprep.subr.bf16.mxu1 %v1435_v50  ;;  %1329 = vmatprep.subr.bf16.mxu0 %v1438_v53 }
 0x197   : > { %v666_v20 = vmul.f32 %v1678_v11, %v1678_v11 }
 0x198   : > { %v1686_v16 = vsub.f32 %v593_v56, %v654_v12  ;;  %v1688_v17 = vsub.f32 %v595_v60, %v654_v12  ;;  %v671_v18 = vadd.f32 %v664_v14, %v663_v13  ;;  %v1690_v19 = vsub.f32 %v636_v62, %v654_v12  ;;  %v1441_v56 = vld [vmem:[%s1846_s5 + $0xa0] sm:$0xff]   ;;  %v1445_v60 = vld [vmem:[%s1846_s5 + $0xa8] sm:$0xff]   ;;  %v1447_v62 = vld [vmem:[%s1846_s5 + $0xf0] sm:$0xff]  }
 0x199   : > { %v1694_v22 = vsub.f32 %v638_v3, %v654_v12  ;;  %1350 = vmatpush3.bf16.msra.mxu1 %v1437_v52  ;;  %1330 = vmatpush3.bf16.msra.mxu0 %v1440_v55  ;;  %v1452_v3 = vld [vmem:[%s1846_s5 + $0x38] sm:$0xff]  }
 0x19a   : > { %v672_v21 = vadd.f32 %v671_v18, %v665_v15  ;;  %v667_v23 = vmul.f32 %v1686_v16, %v1686_v16  ;;  %v668_v24 = vmul.f32 %v1688_v17, %v1688_v17  ;;  %v669_v26 = vmul.f32 %v1690_v19, %v1690_v19  ;;  %1351 = vmatprep.subr.bf16.mxu1 %v1439_v54  ;;  %v640_v15 = vld [vmem:[%s1844_s3] sm:$0xf] }
 0x19b   : > { %v670_v28 = vmul.f32 %v1694_v22, %v1694_v22  ;;  %1331 = vmatprep.subr.bf16.mxu0 %v1442_v57  ;;  %v641_v18 = vld [vmem:[%s1845_s4] sm:$0xf] }
 0x19c   : > { %v673_v25 = vadd.f32 %v672_v21, %v666_v20  ;;  %v676_v27 = vadd.f32 %v668_v24, %v667_v23  ;;  %v699_v20 = vrot.slane %v640_v15, %v1657_v38  ;;  %v703_v21 = vrot.slane %v640_v15, %v1664_v41 }
 0x19d   : > { %1352 = vmatpush3.bf16.msra.mxu1 %v1441_v56  ;;  %1332 = vmatpush3.bf16.msra.mxu0 %v1444_v59  ;;  %v711_v23 = vrot.slane %v640_v15, %v1669_v45  ;;  %v728_v32 = vrot.slane %v641_v18, %v1657_v38  ;;  %v736_v42 = vrot.slane %v641_v18, %v1662_v40 }
 0x19e   : > { %674 = vadd.xlane.f32.xlu1 %v673_v25  ;;  %v677_v29 = vadd.f32 %v676_v27, %v669_v26  ;;  %1353 = vmatprep.subr.bf16.mxu1 %v1443_v58  ;;  %v707_v25 = vrot.slane %v640_v15, %v1662_v40  ;;  %v732_v26 = vrot.slane %v641_v18, %v1664_v41 }
 0x19f   : > { %1333 = vmatprep.subr.bf16.mxu0 %v1446_v61  ;;  %v740_v27 = vrot.slane %v641_v18, %v1669_v45 }
 0x1a0   : > { %v678_v30 = vadd.f32 %v677_v29, %v670_v28 }
 0x1a1   : > { %1354 = vmatpush3.bf16.msra.mxu1 %v1445_v60  ;;  %1334 = vmatpush3.bf16.msra.mxu0 %v1448_v63 }
 0x1a2   : > { %679 = vadd.xlane.f32.xlu1 %v678_v30  ;;  %1355 = vmatprep.subr.bf16.mxu1 %v1447_v62 }
 0x1a3   : > { %1335 = vmatprep.subr.bf16.mxu0 %v1450_v1 }
 0x1a5   : > { %1356 = vmatpush3.bf16.msra.mxu1 %v1449_v0  ;;  %1336 = vmatpush3.bf16.msra.mxu0 %v1452_v3 }
 0x1a6   : > { %1357 = vmatprep.subr.bf16.mxu1 %v1451_v2 }
 0x1a9   : > { %1358 = vmatpush3.bf16.msra.mxu1 %v1453_v4 }
 0x22b   : > { %v675_v5 = vpop.xlane.xlu1 %674 }
 0x22c   : > { %v681_v6 = vmul.f32 0.001953125, %v675_v5 }
 0x22e   : > { %v683_v10 = vadd.f32 1e-05, %v681_v6 }
 0x22f   : > { %v680_v12 = vpop.xlane.xlu1 %679 }
 0x230   : > { %1454 = vrsqrt.f32 %v683_v10  ;;  %v682_v13 = vmul.f32 0.001953125, %v680_v12 }
 0x232   : > { %v684_v14 = vadd.f32 1e-05, %v682_v13 }
 0x234   : > { %1456 = vrsqrt.f32 %v684_v14 }
 0x23a   : > { %v1455_v24 = vpop.eup %1454 }
 0x23b   : > { %v688_v28 = vmul.f32 %v1455_v24, %v1674_v8  ;;  %v690_v29 = vmul.f32 %v1455_v24, %v1678_v11  ;;  %v687_v30 = vmul.f32 %v1455_v24, %v1672_v7  ;;  %v689_v31 = vmul.f32 %v1455_v24, %v1676_v9 }
 0x23d   : > { %v717_v35 = vmul.f32 %v703_v21, %v688_v28  ;;  %v719_v36 = vmul.f32 %v711_v23, %v690_v29  ;;  %v716_v37 = vmul.f32 %v699_v20, %v687_v30  ;;  %v718_v43 = vmul.f32 %v707_v25, %v689_v31 }
 0x23e   : > { %v1457_v39 = vpop.eup %1456 }
 0x23f   : > { %v692_v41 = vmul.f32 %v1457_v39, %v1688_v17  ;;  %v746_v45 = vadd.f32 %v732_v26, %v717_v35  ;;  %v694_v8 = vmul.f32 %v1457_v39, %v1694_v22  ;;  %v748_v44 = vadd.f32 %v740_v27, %v719_v36 }
 0x240   : > { %v691_v11 = vmul.f32 %v1457_v39, %v1686_v16  ;;  %v745_v7 = vadd.f32 %v728_v32, %v716_v37  ;;  %v693_v9 = vmul.f32 %v1457_v39, %v1690_v19  ;;  %v747_v50 = vadd.f32 %v736_v42, %v718_v43  ;;  %v1284_v43 = vld [vmem:[%s1847_s6] ss:$0 sm:$0xff] }
 0x241   : > { %v721_v46 = vmul.f32 %v703_v21, %v692_v41  ;;  %v762_v38 = vmul.f32 0.70710677, %v746_v45  ;;  %v723_v47 = vmul.f32 %v711_v23, %v694_v8  ;;  %v764_v48 = vmul.f32 0.70710677, %v748_v44 }
 0x242   : > { %v720_v49 = vmul.f32 %v699_v20, %v691_v11  ;;  %v761_v52 = vmul.f32 0.70710677, %v745_v7  ;;  %v722_v53 = vmul.f32 %v707_v25, %v693_v9  ;;  %v763_v19 = vmul.f32 0.70710677, %v747_v50 }
 0x243   : > { %v750_v51 = vadd.f32 %v732_v26, %v721_v46  ;;  %1458 = verf.f32 %v762_v38  ;;  %v752_v40 = vadd.f32 %v740_v27, %v723_v47  ;;  %v754_v62 = vmul.f32 0.5, %v746_v45 }
 0x244   : > { %1460 = verf.f32 %v764_v48  ;;  %v749_v17 = vadd.f32 %v728_v32, %v720_v49  ;;  %v751_v16 = vadd.f32 %v736_v42, %v722_v53  ;;  %v756_v3 = vmul.f32 0.5, %v748_v44 }
 0x245   : > { %v766_v22 = vmul.f32 0.70710677, %v750_v51  ;;  %v768_v54 = vmul.f32 0.70710677, %v752_v40  ;;  %1462 = verf.f32 %v761_v52  ;;  %v758_v1 = vmul.f32 0.5, %v750_v51 }
 0x246   : > { %v765_v55 = vmul.f32 0.70710677, %v749_v17  ;;  %v767_v56 = vmul.f32 0.70710677, %v751_v16  ;;  %v760_v6 = vmul.f32 0.5, %v752_v40  ;;  %v753_v12 = vmul.f32 0.5, %v745_v7 }
 0x247   : > { %1464 = verf.f32 %v766_v22  ;;  %v755_v13 = vmul.f32 0.5, %v747_v50  ;;  %v757_v20 = vmul.f32 0.5, %v749_v17  ;;  %v759_v26 = vmul.f32 0.5, %v751_v16 }
 0x248   : > { %1466 = verf.f32 %v768_v54 }
 0x249   : > { %1468 = verf.f32 %v765_v55 }
 0x24a   : > { %1470 = verf.f32 %v763_v19 }
 0x24b   : > { %1472 = verf.f32 %v767_v56 }
 0x24d   : > { %v1459_v57 = vpop.eup %1458 }
 0x24e   : > { %v1461_v58 = vpop.eup %1460  ;;  %v778_v60 = vadd.f32 1.0, %v1459_v57 }
 0x24f   : > { %v1463_v59 = vpop.eup %1462  ;;  %v780_v63 = vadd.f32 1.0, %v1461_v58 }
 0x250   : > { %v777_v4 = vadd.f32 1.0, %v1463_v59  ;;  %v786_v15 = vmul.f32 %v778_v60, %v754_v62 }
 0x251   : > { %v1465_v61 = vpop.eup %1464  ;;  %v788_v24 = vmul.f32 %v780_v63, %v756_v3  ;;  %v1317_v63 = vld [vmem:[%s1848_s7] ss:$0 sm:$0xff] }
 0x252   : > { %v1467_v0 = vpop.eup %1466  ;;  %v782_v2 = vadd.f32 1.0, %v1465_v61  ;;  %v785_v29 = vmul.f32 %v777_v4, %v753_v12 }
 0x253   : > { %v1469_v5 = vpop.eup %1468  ;;  %v784_v10 = vadd.f32 1.0, %v1467_v0 }
 0x254   : > { %v1471_v14 = vpop.eup %1470  ;;  %v790_v18 = vmul.f32 %v782_v2, %v758_v1  ;;  %v781_v21 = vadd.f32 1.0, %v1469_v5  ;;  %v1318_v2 = vld [vmem:[%s1849_s8] ss:$0 sm:$0xff] }
 0x255   : > { %v1473_v23 = vpop.eup %1472  ;;  %v792_v25 = vmul.f32 %v784_v10, %v760_v6  ;;  %v779_v27 = vadd.f32 1.0, %v1471_v14 }
 0x256   : > { %v794_v28 = vpack.c.bf16 %v790_v18, %v786_v15  ;;  %v789_v30 = vmul.f32 %v781_v21, %v757_v20  ;;  %v783_v31 = vadd.f32 1.0, %v1473_v23 }
 0x257   : > { %v796_v32 = vpack.c.bf16 %v792_v25, %v788_v24  ;;  %v787_v36 = vmul.f32 %v779_v27, %v755_v13 }
 0x258   : > { %1092 = vmatprep.mubr.bf16.mxu0 %v794_v28  ;;  %v793_v35 = vpack.c.bf16 %v789_v30, %v785_v29  ;;  %v791_v37 = vmul.f32 %v783_v31, %v759_v26 }
 0x259   : > { %1133 = vmatprep.mubr.bf16.mxu1 %v796_v32 }
 0x25a   : > { %1093 = vmatmul.mubr.bf16.vlgmr.msra.gmra.mrb[4].mxu0 %v793_v35  ;;  %v795_v39 = vpack.c.bf16 %v791_v37, %v787_v36 }
 0x25c   : > { %1134 = vmatmul.mubr.bf16.vlgmr.msra.gmra.mrb[4].mxu1 %v795_v39 }
 0x32d   : > { %v1337_v42 = vpop.f32.mrb[4].mxu0 }
 0x32e   : > { %v1338_v41 = vpop.f32.mrb[5].mxu0 }
 0x32f   : > { %v1359_v45 = vpop.f32.mrb[4].mxu1  ;;  %v1339_v8 = vadd.f32 %v1338_v41, %v1337_v42  ;;  %v1340_v44 = vpop.f32.mrb[6].mxu0 }
 0x330   : > { %v1360_v11 = vpop.f32.mrb[5].mxu1  ;;  %v1341_v7 = vpop.f32.mrb[7].mxu0 }
 0x331   : > { %v1095_v9 = vadd.f32 %v1339_v8, %v1284_v43  ;;  %v1361_v46 = vadd.f32 %v1360_v11, %v1359_v45  ;;  %v1362_v38 = vpop.f32.mrb[6].mxu1  ;;  %v1342_v47 = vadd.f32 %v1341_v7, %v1340_v44 }
 0x332   : > { %v1363_v48 = vpop.f32.mrb[7].mxu1 }
 0x333   : > { %v1098_v49 = vadd.f32 %v1342_v47, %v1284_v43  ;;  %v1364_v50 = vadd.f32 %v1363_v48, %v1362_v38  ;;  %v1136_v51 = vadd.f32 %v1361_v46, %v1095_v9 }
 0x335   : > { %1144 = vadd.xlane.f32.xlu0 %v1136_v51  ;;  %v1139_v40 = vadd.f32 %v1364_v50, %v1098_v49 }
 0x337   : > { %1146 = vadd.xlane.f32.xlu1 %v1139_v40 }
 0x3c2   : > { %v1145_v52 = vpop.xlane.xlu0 %1144 }
 0x3c3   : > { %v1149_v17 = vmul.f32 0.0078125, %v1145_v52 }
 0x3c4   : > { %v1147_v53 = vpop.xlane.xlu1 %1146 }
 0x3c5   : > { %v1151_v22 = vsub.f32 %v1136_v51, %v1149_v17  ;;  %v1150_v54 = vmul.f32 0.0078125, %v1147_v53 }
 0x3c7   : > { %v1152_v55 = vsub.f32 %v1139_v40, %v1150_v54  ;;  %v1153_v16 = vmul.f32 %v1151_v22, %v1151_v22 }
 0x3c9   : > { %1155 = vadd.xlane.f32.xlu0 %v1153_v16  ;;  %v1154_v19 = vmul.f32 %v1152_v55, %v1152_v55 }
 0x3cb   : > { %1157 = vadd.xlane.f32.xlu1 %v1154_v19 }
 0x456   : > { %v1156_v56 = vpop.xlane.xlu0 %1155 }
 0x457   : > { %v1159_v57 = vmul.f32 0.0078125, %v1156_v56 }
 0x458   : > { %v1158_v58 = vpop.xlane.xlu1 %1157 }
 0x459   : > { %v1161_v59 = vadd.f32 1e-05, %v1159_v57  ;;  %v1160_v60 = vmul.f32 0.0078125, %v1158_v58 }
 0x45b   : > { %1474 = vrsqrt.f32 %v1161_v59  ;;  %v1162_v61 = vadd.f32 1e-05, %v1160_v60 }
 0x45d   : > { %1476 = vrsqrt.f32 %v1162_v61 }
 0x465   : > { %v1475_v62 = vpop.eup %1474 }
 0x466   : > { %v1165_v0 = vmul.f32 %v1475_v62, %v1151_v22 }
 0x467   : > { %v1477_v1 = vpop.eup %1476 }
 0x468   : > { %v1173_v3 = vmul.f32 %v1317_v63, %v1165_v0  ;;  %v1166_v4 = vmul.f32 %v1477_v1, %v1152_v55 }
 0x46a   : > { %v1181_v5 = vadd.f32 %v1318_v2, %v1173_v3  ;;  %v1174_v6 = vmul.f32 %v1317_v63, %v1166_v4 }
 0x46c   : > { %v1183_v10 = vadd.f32 %v1181_v5, %v1651_v33  ;;  %v1182_v12 = vadd.f32 %v1318_v2, %v1174_v6 }
 0x46e   : > { %1185 = vst [vmem:[%s334_s29] sm:$0xff] %v1183_v10  ;;  %v1184_v13 = vadd.f32 %v1182_v12, %v1653_v34 }
 0x470   : > { %1186 = vst [vmem:[%s334_s29 + $0x8] sm:$0xff] %v1184_v13 }
 0x471 PF: > { %s19_s30 = sadd.s32 1, %s1484_s30  }
 0x472   : > { %p16_p4 = scmp.ge.s32.totalorder %s19_s30, 4  }
 0x474   :  { %18 = sbr.rel (!%p16_p4) target bundleno = 1 (0x1), region = 86 }

</bundles_post_ra>
